<compile_context>
chip_gen: v7x
topology: tpu7x:2x2x1
jax: 0.10.0
libtpu: 0.0.40
codegen_flags: <defaults>
</compile_context>

<pallas_src>
import jax
import jax.numpy as jnp
from jax.experimental import pallas as pl
from jax.experimental.pallas import tpu as pltpu

LANE = 128
SUBLANE = 8


def _round_up(x, m):
    return ((x + m - 1) // m) * m


def _cdiv(a, b):
    return (a + b - 1) // b


def _leaky_relu(x, slope=0.2):
    return jnp.where(x > 0, x, slope * x)


def generator_kernel(x_ref,
                     w1_ref, b1_ref,
                     w2_ref, b2_ref,
                     w3_ref, b3_ref,
                     w4_ref, b4_ref,
                     out_ref):
    # x_ref and w*_ref are bf16 -> MXU matmuls with f32 accumulation.
    # Bias-add + leaky_relu happen on the f32 accumulator; the intermediate is
    # stored bf16 (single cast) and fed directly to the next dot.
    h = jnp.dot(x_ref[...], w1_ref[...],
                preferred_element_type=jnp.float32) + b1_ref[...]
    h = _leaky_relu(h).astype(jnp.bfloat16)
    # dropout(0.3): identity in eval mode

    h = jnp.dot(h, w2_ref[...],
                preferred_element_type=jnp.float32) + b2_ref[...]
    h = _leaky_relu(h).astype(jnp.bfloat16)

    h = jnp.dot(h, w3_ref[...],
                preferred_element_type=jnp.float32) + b3_ref[...]
    h = _leaky_relu(h).astype(jnp.bfloat16)

    h = jnp.dot(h, w4_ref[...],
                preferred_element_type=jnp.float32) + b4_ref[...]
    out_ref[...] = jnp.tanh(h).astype(out_ref.dtype)


def pad_and_cast_params(params):
    """Zero-pad every Linear layer to lane-aligned (multiple-of-128) feature
    dims; weights -> bf16 for the MXU, biases stay f32 (added post-accumulate).
    Zero padding is exact: padded activations are 0 and padded weight
    rows/cols contribute nothing."""
    out = {}
    for idx in range(1, 5):
        w = params[f"w{idx}"]
        b = params[f"b{idx}"].reshape(1, -1)
        fi, fo = w.shape
        fip, fop = _round_up(fi, LANE), _round_up(fo, LANE)
        out[f"w{idx}"] = (jnp.zeros((fip, fop), jnp.bfloat16)
                          .at[:fi, :fo].set(w.astype(jnp.bfloat16)))
        out[f"b{idx}"] = (jnp.zeros((1, fop), jnp.float32)
                          .at[:, :fo].set(b.astype(jnp.float32)))
    return out


def _num_tensorcores():
    """Best-effort: 2 TensorCores per device on v7x/v4/v3-class chips,
    1 on v5e/v6e. Falls back to 1 if the query fails."""
    try:
        kind = jax.devices()[0].device_kind.lower()
    except Exception:  # pragma: no cover - defensive
        return 1
    if "v5" in kind or "v6" in kind:
        return 1
    return 2


def _pick_batch_tile(B, batch_tile, num_tc):
    if batch_tile is not None:
        return _round_up(batch_tile, SUBLANE)
    Bp8 = _round_up(max(B, 1), SUBLANE)
    if num_tc <= 1:
        # Single TensorCore: fewest / fattest grid steps amortize the ~0.35 us
        # per-step overhead; cap the tile so the (tb x 1024 f32) accumulator
        # stays comfortably inside VMEM.
        return min(Bp8, 512)
    # Dual TensorCore (v7x): even number of grid steps with equal work per TC.
    steps = max(2, 2 * _cdiv(Bp8, 2 * 256))
    return _round_up(_cdiv(Bp8, steps), SUBLANE)


def _vmem_limit_bytes(tb, in_pad, h1p, h2p, h3p, out_pad, weight_bufs):
    x_bytes = tb * in_pad * 2 * 2                       # bf16 x tile, double-buffered
    out_bytes = tb * out_pad * 4 * 2                    # f32 out tile, double-buffered
    w_bytes = (in_pad * h1p + h1p * h2p + h2p * h3p
               + h3p * out_pad) * 2 * weight_bufs       # bf16 weights
    b_bytes = (h1p + h2p + h3p + out_pad) * 4 * weight_bufs
    act_spill = tb * max(h1p, h2p, h3p, out_pad) * (4 + 2)  # f32 acc + bf16 copy
    total = x_bytes + out_bytes + w_bytes + b_bytes + act_spill
    total = int(total * 1.5) + (4 << 20)                # compiler scratch headroom
    return max(16 << 20, min(total, 48 << 20))


def _build_generator_call(tb, Bp, in_pad, h1p, h2p, h3p, out_pad,
                          use_buffered_weights):
    def const_spec(shape):
        if use_buffered_weights:
            # Grid-invariant blocks: single-buffer them (no pipelining needed).
            return pl.BlockSpec(shape, lambda i: (0, 0),
                                pipeline_mode=pl.Buffered(1))
        return pl.BlockSpec(shape, lambda i: (0, 0))

    weight_bufs = 1 if use_buffered_weights else 2
    flops = 2 * Bp * (in_pad * h1p + h1p * h2p + h2p * h3p + h3p * out_pad)
    bytes_accessed = (
        Bp * in_pad * 2 + Bp * out_pad * 4
        + (in_pad * h1p + h1p * h2p + h2p * h3p + h3p * out_pad) * 2
        + (h1p + h2p + h3p + out_pad) * 4)

    return pl.pallas_call(
        generator_kernel,
        out_shape=jax.ShapeDtypeStruct((Bp, out_pad), jnp.float32),
        grid_spec=pltpu.PrefetchScalarGridSpec(
            num_scalar_prefetch=0,
            grid=(Bp // tb,),
            in_specs=[
                pl.BlockSpec((tb, in_pad), lambda i: (i, 0)),
                const_spec((in_pad, h1p)), const_spec((1, h1p)),
                const_spec((h1p, h2p)), const_spec((1, h2p)),
                const_spec((h2p, h3p)), const_spec((1, h3p)),
                const_spec((h3p, out_pad)), const_spec((1, out_pad)),
            ],
            out_specs=pl.BlockSpec((tb, out_pad), lambda i: (i, 0)),
        ),
        compiler_params=pltpu.CompilerParams(
            dimension_semantics=("parallel",),
            vmem_limit_bytes=_vmem_limit_bytes(
                tb, in_pad, h1p, h2p, h3p, out_pad, weight_bufs)),
        cost_estimate=pl.CostEstimate(
            flops=flops,
            transcendentals=Bp * out_pad,
            bytes_accessed=bytes_accessed),
    )


def generator_forward(x, params, *, batch_tile=None):
    """x: [B, input_size] float32. params: dict of w1..w4 ([in,out]) and b1..b4."""
    B, in_features = x.shape
    out_features = params["w4"].shape[1]

    pp = pad_and_cast_params(params)
    in_pad = pp["w1"].shape[0]
    h1p = pp["w1"].shape[1]
    h2p = pp["w2"].shape[1]
    h3p = pp["w3"].shape[1]
    out_pad = pp["w4"].shape[1]

    tb = _pick_batch_tile(B, batch_tile, _num_tensorcores())
    Bp = _round_up(B, tb)

    # Pad x on batch (to a tile multiple) / feature (to lane multiple) and cast
    # to bf16 in the wrapper so the kernel DMAs half the bytes and does no
    # in-kernel casting. Skip the padded materialization when it's not needed.
    if Bp == B and in_pad == in_features:
        x_pad = x.astype(jnp.bfloat16)
    else:
        x_pad = (jnp.zeros((Bp, in_pad), jnp.bfloat16)
                 .at[:B, :in_features].set(x.astype(jnp.bfloat16)))

    args = (x_pad,
            pp["w1"], pp["b1"],
            pp["w2"], pp["b2"],
            pp["w3"], pp["b3"],
            pp["w4"], pp["b4"])

    try:
        call = _build_generator_call(tb, Bp, in_pad, h1p, h2p, h3p, out_pad,
                                     use_buffered_weights=True)
        out_padded = call(*args)
    except Exception:
        # Fallback if pipeline_mode=pl.Buffered(1) is unsupported in this JAX
        # build; only the buffering of grid-invariant blocks differs.
        call = _build_generator_call(tb, Bp, in_pad, h1p, h2p, h3p, out_pad,
                                     use_buffered_weights=False)
        out_padded = call(*args)

    return out_padded[:B, :out_features].astype(x.dtype)


def init_generator_params(key, input_size, hidden_dim, output_size):
    """Deterministic init mimicking torch.nn.Linear default
    (U(-1/sqrt(fan_in), 1/sqrt(fan_in)))."""
    dims = [(input_size, hidden_dim),
            (hidden_dim, hidden_dim * 2),
            (hidden_dim * 2, hidden_dim * 4),
            (hidden_dim * 4, output_size)]
    params = {}
    keys = jax.random.split(key, 8)
    for idx, (fan_in, fan_out) in enumerate(dims, start=1):
        bound = 1.0 / (fan_in ** 0.5)
        params[f"w{idx}"] = jax.random.uniform(
            keys[2 * (idx - 1)], (fan_in, fan_out),
            minval=-bound, maxval=bound, dtype=jnp.float32)
        params[f"b{idx}"] = jax.random.uniform(
            keys[2 * (idx - 1) + 1], (1, fan_out),
            minval=-bound, maxval=bound, dtype=jnp.float32)
    return params


def reference_forward_f32(x, params):
    h = x @ params["w1"] + params["b1"]
    h = jnp.where(h > 0, h, 0.2 * h)
    h = h @ params["w2"] + params["b2"]
    h = jnp.where(h > 0, h, 0.2 * h)
    h = h @ params["w3"] + params["b3"]
    h = jnp.where(h > 0, h, 0.2 * h)
    h = h @ params["w4"] + params["b4"]
    return jnp.tanh(h)


def reference_forward_bf16(x, params):
    """Same numerics as the kernel: bf16 matmul operands, f32 accumulate,
    bias-add + leaky_relu in f32, intermediate cast to bf16."""
    def mm(a, w):
        return jnp.dot(a.astype(jnp.bfloat16), w.astype(jnp.bfloat16),
                       preferred_element_type=jnp.float32)
    h = mm(x, params["w1"]) + params["b1"]
    h = jnp.where(h > 0, h, 0.2 * h)
    h = mm(h, params["w2"]) + params["b2"]
    h = jnp.where(h > 0, h, 0.2 * h)
    h = mm(h, params["w3"]) + params["b3"]
    h = jnp.where(h > 0, h, 0.2 * h)
    h = mm(h, params["w4"]) + params["b4"]
    return jnp.tanh(h)


if __name__ == "__main__":
    key = jax.random.PRNGKey(0)
    k_param, k_x = jax.random.split(key)

    B = 16              # small demo batch
    input_size = 32     # latent z dim
    hidden_dim = 32     # layers: 32 -> 32 -> 64 -> 128 -> 64
    output_size = 64

    params = init_generator_params(k_param, input_size, hidden_dim, output_size)
    x = jax.random.normal(k_x, (B, input_size), dtype=jnp.float32)

    out = generator_forward(x, params)
    out = jax.block_until_ready(out)
    assert out.shape == (B, output_size)

    # Tight check against a reference with identical numerics (bf16 matmuls,
    # f32 accumulate); loose check against the pure-f32 PyTorch-equivalent.
    ref_bf16 = reference_forward_bf16(x, params)
    ref_f32 = reference_forward_f32(x, params)
    assert jnp.allclose(out, ref_bf16, atol=2e-3, rtol=2e-3), "mismatch vs bf16 reference"
    assert jnp.allclose(out, ref_f32, atol=5e-2, rtol=5e-2), "mismatch vs f32 reference"

    print("KERNEL_OK")
</pallas_src>

<mosaic_0001>
module attributes {stable_mosaic.version = 11 : i64} {
  func.func @generator_kernel(%arg0: i32, %arg1: memref<8x128xbf16, #tpu.memory_space<vmem>>, %arg2: memref<128x128xbf16, #tpu.memory_space<vmem>>, %arg3: memref<1x128xf32, #tpu.memory_space<vmem>>, %arg4: memref<128x128xbf16, #tpu.memory_space<vmem>>, %arg5: memref<1x128xf32, #tpu.memory_space<vmem>>, %arg6: memref<128x128xbf16, #tpu.memory_space<vmem>>, %arg7: memref<1x128xf32, #tpu.memory_space<vmem>>, %arg8: memref<128x128xbf16, #tpu.memory_space<vmem>>, %arg9: memref<1x128xf32, #tpu.memory_space<vmem>>, %arg10: memref<8x128xf32, #tpu.memory_space<vmem>>) attributes {dimension_semantics = [#tpu.dimension_semantics<parallel>], iteration_bounds = array<i64: 2>, scalar_prefetch = 0 : i64, scratch_operands = 0 : i64, tpu.core_type = #tpu.core_type<tc>, window_params = [{transform_indices = @transform_0, window_bounds = array<i64: 8, 128>}, {pipeline_mode = #tpu.pipeline_mode<synchronous>, transform_indices = @transform_1, window_bounds = array<i64: 128, 128>}, {pipeline_mode = #tpu.pipeline_mode<synchronous>, transform_indices = @transform_2, window_bounds = array<i64: 1, 128>}, {pipeline_mode = #tpu.pipeline_mode<synchronous>, transform_indices = @transform_3, window_bounds = array<i64: 128, 128>}, {pipeline_mode = #tpu.pipeline_mode<synchronous>, transform_indices = @transform_4, window_bounds = array<i64: 1, 128>}, {pipeline_mode = #tpu.pipeline_mode<synchronous>, transform_indices = @transform_5, window_bounds = array<i64: 128, 128>}, {pipeline_mode = #tpu.pipeline_mode<synchronous>, transform_indices = @transform_6, window_bounds = array<i64: 1, 128>}, {pipeline_mode = #tpu.pipeline_mode<synchronous>, transform_indices = @transform_7, window_bounds = array<i64: 128, 128>}, {pipeline_mode = #tpu.pipeline_mode<synchronous>, transform_indices = @transform_8, window_bounds = array<i64: 1, 128>}, {transform_indices = @transform_9, window_bounds = array<i64: 8, 128>}]} {
    %c0 = arith.constant 0 : index
    %c0_0 = arith.constant 0 : index
    %0 = vector.load %arg1[%c0, %c0_0] : memref<8x128xbf16, #tpu.memory_space<vmem>>, vector<8x128xbf16>
    %c0_1 = arith.constant 0 : index
    %c0_2 = arith.constant 0 : index
    %1 = vector.load %arg2[%c0_1, %c0_2] : memref<128x128xbf16, #tpu.memory_space<vmem>>, vector<128x128xbf16>
    %cst = arith.constant dense<0.000000e+00> : vector<8x128xf32>
    %2 = tpu.matmul %0, %1, %cst {dimension_numbers = #tpu.dot_dimension_numbers<[1], [0], [0], [1], [0, 0, 1, 1], [], []>} : vector<8x128xbf16>, vector<128x128xbf16>, vector<8x128xf32> -> vector<8x128xf32>
    %c0_3 = arith.constant 0 : index
    %c0_4 = arith.constant 0 : index
    %3 = vector.load %arg3[%c0_3, %c0_4] : memref<1x128xf32, #tpu.memory_space<vmem>>, vector<1x128xf32>
    %4 = vector.broadcast %3 : vector<1x128xf32> to vector<8x128xf32>
    %5 = arith.addf %2, %4 : vector<8x128xf32>
    %cst_5 = arith.constant 0.000000e+00 : f32
    %6 = vector.broadcast %cst_5 : f32 to vector<8x128xf32>
    %7 = arith.cmpf ogt, %5, %6 : vector<8x128xf32>
    %cst_6 = arith.constant 2.000000e-01 : f32
    %8 = vector.broadcast %cst_6 : f32 to vector<8x128xf32>
    %9 = arith.mulf %8, %5 : vector<8x128xf32>
    %10 = arith.select %7, %5, %9 : vector<8x128xi1>, vector<8x128xf32>
    %11 = arith.truncf %10 : vector<8x128xf32> to vector<8x128xbf16>
    %c0_7 = arith.constant 0 : index
    %c0_8 = arith.constant 0 : index
    %12 = vector.load %arg4[%c0_7, %c0_8] : memref<128x128xbf16, #tpu.memory_space<vmem>>, vector<128x128xbf16>
    %cst_9 = arith.constant dense<0.000000e+00> : vector<8x128xf32>
    %13 = tpu.matmul %11, %12, %cst_9 {dimension_numbers = #tpu.dot_dimension_numbers<[1], [0], [0], [1], [0, 0, 1, 1], [], []>} : vector<8x128xbf16>, vector<128x128xbf16>, vector<8x128xf32> -> vector<8x128xf32>
    %c0_10 = arith.constant 0 : index
    %c0_11 = arith.constant 0 : index
    %14 = vector.load %arg5[%c0_10, %c0_11] : memref<1x128xf32, #tpu.memory_space<vmem>>, vector<1x128xf32>
    %15 = vector.broadcast %14 : vector<1x128xf32> to vector<8x128xf32>
    %16 = arith.addf %13, %15 : vector<8x128xf32>
    %cst_12 = arith.constant 0.000000e+00 : f32
    %17 = vector.broadcast %cst_12 : f32 to vector<8x128xf32>
    %18 = arith.cmpf ogt, %16, %17 : vector<8x128xf32>
    %cst_13 = arith.constant 2.000000e-01 : f32
    %19 = vector.broadcast %cst_13 : f32 to vector<8x128xf32>
    %20 = arith.mulf %19, %16 : vector<8x128xf32>
    %21 = arith.select %18, %16, %20 : vector<8x128xi1>, vector<8x128xf32>
    %22 = arith.truncf %21 : vector<8x128xf32> to vector<8x128xbf16>
    %c0_14 = arith.constant 0 : index
    %c0_15 = arith.constant 0 : index
    %23 = vector.load %arg6[%c0_14, %c0_15] : memref<128x128xbf16, #tpu.memory_space<vmem>>, vector<128x128xbf16>
    %cst_16 = arith.constant dense<0.000000e+00> : vector<8x128xf32>
    %24 = tpu.matmul %22, %23, %cst_16 {dimension_numbers = #tpu.dot_dimension_numbers<[1], [0], [0], [1], [0, 0, 1, 1], [], []>} : vector<8x128xbf16>, vector<128x128xbf16>, vector<8x128xf32> -> vector<8x128xf32>
    %c0_17 = arith.constant 0 : index
    %c0_18 = arith.constant 0 : index
    %25 = vector.load %arg7[%c0_17, %c0_18] : memref<1x128xf32, #tpu.memory_space<vmem>>, vector<1x128xf32>
    %26 = vector.broadcast %25 : vector<1x128xf32> to vector<8x128xf32>
    %27 = arith.addf %24, %26 : vector<8x128xf32>
    %cst_19 = arith.constant 0.000000e+00 : f32
    %28 = vector.broadcast %cst_19 : f32 to vector<8x128xf32>
    %29 = arith.cmpf ogt, %27, %28 : vector<8x128xf32>
    %cst_20 = arith.constant 2.000000e-01 : f32
    %30 = vector.broadcast %cst_20 : f32 to vector<8x128xf32>
    %31 = arith.mulf %30, %27 : vector<8x128xf32>
    %32 = arith.select %29, %27, %31 : vector<8x128xi1>, vector<8x128xf32>
    %33 = arith.truncf %32 : vector<8x128xf32> to vector<8x128xbf16>
    %c0_21 = arith.constant 0 : index
    %c0_22 = arith.constant 0 : index
    %34 = vector.load %arg8[%c0_21, %c0_22] : memref<128x128xbf16, #tpu.memory_space<vmem>>, vector<128x128xbf16>
    %cst_23 = arith.constant dense<0.000000e+00> : vector<8x128xf32>
    %35 = tpu.matmul %33, %34, %cst_23 {dimension_numbers = #tpu.dot_dimension_numbers<[1], [0], [0], [1], [0, 0, 1, 1], [], []>} : vector<8x128xbf16>, vector<128x128xbf16>, vector<8x128xf32> -> vector<8x128xf32>
    %c0_24 = arith.constant 0 : index
    %c0_25 = arith.constant 0 : index
    %36 = vector.load %arg9[%c0_24, %c0_25] : memref<1x128xf32, #tpu.memory_space<vmem>>, vector<1x128xf32>
    %37 = vector.broadcast %36 : vector<1x128xf32> to vector<8x128xf32>
    %38 = arith.addf %35, %37 : vector<8x128xf32>
    %39 = math.tanh %38 : vector<8x128xf32>
    %c0_26 = arith.constant 0 : index
    %c0_27 = arith.constant 0 : index
    %40 = vector.load %arg10[%c0_26, %c0_27] : memref<8x128xf32, #tpu.memory_space<vmem>>, vector<8x128xf32>
    tpu.vector_store %arg10[%c0_26, %c0_27], %39 {strides = array<i32>} : memref<8x128xf32, #tpu.memory_space<vmem>>, vector<8x128xf32>,
    return
  }
  func.func @transform_0(%arg0: i32) -> (i32, i32) {
    %c0_i32 = arith.constant 0 : i32
    %c0_i32_0 = arith.constant 0 : i32
    return %arg0, %c0_i32 : i32, i32
  }
  func.func @transform_1(%arg0: i32) -> (i32, i32) {
    %c0_i32 = arith.constant 0 : i32
    %c0_i32_0 = arith.constant 0 : i32
    %c0_i32_1 = arith.constant 0 : i32
    return %c0_i32, %c0_i32_0 : i32, i32
  }
  func.func @transform_2(%arg0: i32) -> (i32, i32) {
    %c0_i32 = arith.constant 0 : i32
    %c0_i32_0 = arith.constant 0 : i32
    %c0_i32_1 = arith.constant 0 : i32
    return %c0_i32, %c0_i32_0 : i32, i32
  }
  func.func @transform_3(%arg0: i32) -> (i32, i32) {
    %c0_i32 = arith.constant 0 : i32
    %c0_i32_0 = arith.constant 0 : i32
    %c0_i32_1 = arith.constant 0 : i32
    return %c0_i32, %c0_i32_0 : i32, i32
  }
  func.func @transform_4(%arg0: i32) -> (i32, i32) {
    %c0_i32 = arith.constant 0 : i32
    %c0_i32_0 = arith.constant 0 : i32
    %c0_i32_1 = arith.constant 0 : i32
    return %c0_i32, %c0_i32_0 : i32, i32
  }
  func.func @transform_5(%arg0: i32) -> (i32, i32) {
    %c0_i32 = arith.constant 0 : i32
    %c0_i32_0 = arith.constant 0 : i32
    %c0_i32_1 = arith.constant 0 : i32
    return %c0_i32, %c0_i32_0 : i32, i32
  }
  func.func @transform_6(%arg0: i32) -> (i32, i32) {
    %c0_i32 = arith.constant 0 : i32
    %c0_i32_0 = arith.constant 0 : i32
    %c0_i32_1 = arith.constant 0 : i32
    return %c0_i32, %c0_i32_0 : i32, i32
  }
  func.func @transform_7(%arg0: i32) -> (i32, i32) {
    %c0_i32 = arith.constant 0 : i32
    %c0_i32_0 = arith.constant 0 : i32
    %c0_i32_1 = arith.constant 0 : i32
    return %c0_i32, %c0_i32_0 : i32, i32
  }
  func.func @transform_8(%arg0: i32) -> (i32, i32) {
    %c0_i32 = arith.constant 0 : i32
    %c0_i32_0 = arith.constant 0 : i32
    %c0_i32_1 = arith.constant 0 : i32
    return %c0_i32, %c0_i32_0 : i32, i32
  }
  func.func @transform_9(%arg0: i32) -> (i32, i32) {
    %c0_i32 = arith.constant 0 : i32
    %c0_i32_0 = arith.constant 0 : i32
    return %arg0, %c0_i32 : i32, i32
  }
}

module attributes {stable_mosaic.version = 11 : i64} {
  func.func @generator_kernel(%arg0: i32, %arg1: memref<8x128xbf16, #tpu.memory_space<vmem>>, %arg2: memref<128x128xbf16, #tpu.memory_space<vmem>>, %arg3: memref<1x128xf32, #tpu.memory_space<vmem>>, %arg4: memref<128x128xbf16, #tpu.memory_space<vmem>>, %arg5: memref<1x128xf32, #tpu.memory_space<vmem>>, %arg6: memref<128x128xbf16, #tpu.memory_space<vmem>>, %arg7: memref<1x128xf32, #tpu.memory_space<vmem>>, %arg8: memref<128x128xbf16, #tpu.memory_space<vmem>>, %arg9: memref<1x128xf32, #tpu.memory_space<vmem>>, %arg10: memref<8x128xf32, #tpu.memory_space<vmem>>) attributes {dimension_semantics = [#tpu.dimension_semantics<parallel>], iteration_bounds = array<i64: 2>, scalar_prefetch = 0 : i64, scratch_operands = 0 : i64, tpu.core_type = #tpu.core_type<tc>, window_params = [{transform_indices = @transform_0, window_bounds = array<i64: 8, 128>}, {pipeline_mode = #tpu.pipeline_mode<synchronous>, transform_indices = @transform_1, window_bounds = array<i64: 128, 128>}, {pipeline_mode = #tpu.pipeline_mode<synchronous>, transform_indices = @transform_2, window_bounds = array<i64: 1, 128>}, {pipeline_mode = #tpu.pipeline_mode<synchronous>, transform_indices = @transform_3, window_bounds = array<i64: 128, 128>}, {pipeline_mode = #tpu.pipeline_mode<synchronous>, transform_indices = @transform_4, window_bounds = array<i64: 1, 128>}, {pipeline_mode = #tpu.pipeline_mode<synchronous>, transform_indices = @transform_5, window_bounds = array<i64: 128, 128>}, {pipeline_mode = #tpu.pipeline_mode<synchronous>, transform_indices = @transform_6, window_bounds = array<i64: 1, 128>}, {pipeline_mode = #tpu.pipeline_mode<synchronous>, transform_indices = @transform_7, window_bounds = array<i64: 128, 128>}, {pipeline_mode = #tpu.pipeline_mode<synchronous>, transform_indices = @transform_8, window_bounds = array<i64: 1, 128>}, {transform_indices = @transform_9, window_bounds = array<i64: 8, 128>}]} {
    %c0 = arith.constant 0 : index
    %c0_0 = arith.constant 0 : index
    %0 = vector.load %arg1[%c0, %c0_0] : memref<8x128xbf16, #tpu.memory_space<vmem>>, vector<8x128xbf16>
    %c0_1 = arith.constant 0 : index
    %c0_2 = arith.constant 0 : index
    %1 = vector.load %arg2[%c0_1, %c0_2] : memref<128x128xbf16, #tpu.memory_space<vmem>>, vector<128x128xbf16>
    %cst = arith.constant dense<0.000000e+00> : vector<8x128xf32>
    %2 = tpu.matmul %0, %1, %cst {dimension_numbers = #tpu.dot_dimension_numbers<[1], [0], [0], [1], [0, 0, 1, 1], [], []>} : vector<8x128xbf16>, vector<128x128xbf16>, vector<8x128xf32> -> vector<8x128xf32>
    %c0_3 = arith.constant 0 : index
    %c0_4 = arith.constant 0 : index
    %3 = vector.load %arg3[%c0_3, %c0_4] : memref<1x128xf32, #tpu.memory_space<vmem>>, vector<1x128xf32>
    %4 = vector.broadcast %3 : vector<1x128xf32> to vector<8x128xf32>
    %5 = arith.addf %2, %4 : vector<8x128xf32>
    %cst_5 = arith.constant 0.000000e+00 : f32
    %6 = vector.broadcast %cst_5 : f32 to vector<8x128xf32>
    %7 = arith.cmpf ogt, %5, %6 : vector<8x128xf32>
    %cst_6 = arith.constant 2.000000e-01 : f32
    %8 = vector.broadcast %cst_6 : f32 to vector<8x128xf32>
    %9 = arith.mulf %8, %5 : vector<8x128xf32>
    %10 = arith.select %7, %5, %9 : vector<8x128xi1>, vector<8x128xf32>
    %11 = arith.truncf %10 : vector<8x128xf32> to vector<8x128xbf16>
    %c0_7 = arith.constant 0 : index
    %c0_8 = arith.constant 0 : index
    %12 = vector.load %arg4[%c0_7, %c0_8] : memref<128x128xbf16, #tpu.memory_space<vmem>>, vector<128x128xbf16>
    %cst_9 = arith.constant dense<0.000000e+00> : vector<8x128xf32>
    %13 = tpu.matmul %11, %12, %cst_9 {dimension_numbers = #tpu.dot_dimension_numbers<[1], [0], [0], [1], [0, 0, 1, 1], [], []>} : vector<8x128xbf16>, vector<128x128xbf16>, vector<8x128xf32> -> vector<8x128xf32>
    %c0_10 = arith.constant 0 : index
    %c0_11 = arith.constant 0 : index
    %14 = vector.load %arg5[%c0_10, %c0_11] : memref<1x128xf32, #tpu.memory_space<vmem>>, vector<1x128xf32>
    %15 = vector.broadcast %14 : vector<1x128xf32> to vector<8x128xf32>
    %16 = arith.addf %13, %15 : vector<8x128xf32>
    %cst_12 = arith.constant 0.000000e+00 : f32
    %17 = vector.broadcast %cst_12 : f32 to vector<8x128xf32>
    %18 = arith.cmpf ogt, %16, %17 : vector<8x128xf32>
    %cst_13 = arith.constant 2.000000e-01 : f32
    %19 = vector.broadcast %cst_13 : f32 to vector<8x128xf32>
    %20 = arith.mulf %19, %16 : vector<8x128xf32>
    %21 = arith.select %18, %16, %20 : vector<8x128xi1>, vector<8x128xf32>
    %22 = arith.truncf %21 : vector<8x128xf32> to vector<8x128xbf16>
    %c0_14 = arith.constant 0 : index
    %c0_15 = arith.constant 0 : index
    %23 = vector.load %arg6[%c0_14, %c0_15] : memref<128x128xbf16, #tpu.memory_space<vmem>>, vector<128x128xbf16>
    %cst_16 = arith.constant dense<0.000000e+00> : vector<8x128xf32>
    %24 = tpu.matmul %22, %23, %cst_16 {dimension_numbers = #tpu.dot_dimension_numbers<[1], [0], [0], [1], [0, 0, 1, 1], [], []>} : vector<8x128xbf16>, vector<128x128xbf16>, vector<8x128xf32> -> vector<8x128xf32>
    %c0_17 = arith.constant 0 : index
    %c0_18 = arith.constant 0 : index
    %25 = vector.load %arg7[%c0_17, %c0_18] : memref<1x128xf32, #tpu.memory_space<vmem>>, vector<1x128xf32>
    %26 = vector.broadcast %25 : vector<1x128xf32> to vector<8x128xf32>
    %27 = arith.addf %24, %26 : vector<8x128xf32>
    %cst_19 = arith.constant 0.000000e+00 : f32
    %28 = vector.broadcast %cst_19 : f32 to vector<8x128xf32>
    %29 = arith.cmpf ogt, %27, %28 : vector<8x128xf32>
    %cst_20 = arith.constant 2.000000e-01 : f32
    %30 = vector.broadcast %cst_20 : f32 to vector<8x128xf32>
    %31 = arith.mulf %30, %27 : vector<8x128xf32>
    %32 = arith.select %29, %27, %31 : vector<8x128xi1>, vector<8x128xf32>
    %33 = arith.truncf %32 : vector<8x128xf32> to vector<8x128xbf16>
    %c0_21 = arith.constant 0 : index
    %c0_22 = arith.constant 0 : index
    %34 = vector.load %arg8[%c0_21, %c0_22] : memref<128x128xbf16, #tpu.memory_space<vmem>>, vector<128x128xbf16>
    %cst_23 = arith.constant dense<0.000000e+00> : vector<8x128xf32>
    %35 = tpu.matmul %33, %34, %cst_23 {dimension_numbers = #tpu.dot_dimension_numbers<[1], [0], [0], [1], [0, 0, 1, 1], [], []>} : vector<8x128xbf16>, vector<128x128xbf16>, vector<8x128xf32> -> vector<8x128xf32>
    %c0_24 = arith.constant 0 : index
    %c0_25 = arith.constant 0 : index
    %36 = vector.load %arg9[%c0_24, %c0_25] : memref<1x128xf32, #tpu.memory_space<vmem>>, vector<1x128xf32>
    %37 = vector.broadcast %36 : vector<1x128xf32> to vector<8x128xf32>
    %38 = arith.addf %35, %37 : vector<8x128xf32>
    %39 = math.tanh %38 : vector<8x128xf32>
    %c0_26 = arith.constant 0 : index
    %c0_27 = arith.constant 0 : index
    %40 = vector.load %arg10[%c0_26, %c0_27] : memref<8x128xf32, #tpu.memory_space<vmem>>, vector<8x128xf32>
    tpu.vector_store %arg10[%c0_26, %c0_27], %39 {strides = array<i32>} : memref<8x128xf32, #tpu.memory_space<vmem>>, vector<8x128xf32>,
    return
  }
  func.func @transform_0(%arg0: i32) -> (i32, i32) {
    %c0_i32 = arith.constant 0 : i32
    %c0_i32_0 = arith.constant 0 : i32
    return %arg0, %c0_i32 : i32, i32
  }
  func.func @transform_1(%arg0: i32) -> (i32, i32) {
    %c0_i32 = arith.constant 0 : i32
    %c0_i32_0 = arith.constant 0 : i32
    %c0_i32_1 = arith.constant 0 : i32
    return %c0_i32, %c0_i32_0 : i32, i32
  }
  func.func @transform_2(%arg0: i32) -> (i32, i32) {
    %c0_i32 = arith.constant 0 : i32
    %c0_i32_0 = arith.constant 0 : i32
    %c0_i32_1 = arith.constant 0 : i32
    return %c0_i32, %c0_i32_0 : i32, i32
  }
  func.func @transform_3(%arg0: i32) -> (i32, i32) {
    %c0_i32 = arith.constant 0 : i32
    %c0_i32_0 = arith.constant 0 : i32
    %c0_i32_1 = arith.constant 0 : i32
    return %c0_i32, %c0_i32_0 : i32, i32
  }
  func.func @transform_4(%arg0: i32) -> (i32, i32) {
    %c0_i32 = arith.constant 0 : i32
    %c0_i32_0 = arith.constant 0 : i32
    %c0_i32_1 = arith.constant 0 : i32
    return %c0_i32, %c0_i32_0 : i32, i32
  }
  func.func @transform_5(%arg0: i32) -> (i32, i32) {
    %c0_i32 = arith.constant 0 : i32
    %c0_i32_0 = arith.constant 0 : i32
    %c0_i32_1 = arith.constant 0 : i32
    return %c0_i32, %c0_i32_0 : i32, i32
  }
  func.func @transform_6(%arg0: i32) -> (i32, i32) {
    %c0_i32 = arith.constant 0 : i32
    %c0_i32_0 = arith.constant 0 : i32
    %c0_i32_1 = arith.constant 0 : i32
    return %c0_i32, %c0_i32_0 : i32, i32
  }
  func.func @transform_7(%arg0: i32) -> (i32, i32) {
    %c0_i32 = arith.constant 0 : i32
    %c0_i32_0 = arith.constant 0 : i32
    %c0_i32_1 = arith.constant 0 : i32
    return %c0_i32, %c0_i32_0 : i32, i32
  }
  func.func @transform_8(%arg0: i32) -> (i32, i32) {
    %c0_i32 = arith.constant 0 : i32
    %c0_i32_0 = arith.constant 0 : i32
    %c0_i32_1 = arith.constant 0 : i32
    return %c0_i32, %c0_i32_0 : i32, i32
  }
  func.func @transform_9(%arg0: i32) -> (i32, i32) {
    %c0_i32 = arith.constant 0 : i32
    %c0_i32_0 = arith.constant 0 : i32
    return %arg0, %c0_i32 : i32, i32
  }
}

</mosaic_0001>

<bundles_post_ra>
// kernel: tpu_custom_call.1
= control target key start
LH: loop header
LB: loop body
LE: loop exit
PB: predicated region body
PF: predicated region fallthrough
CT: control target
= control target key end

     0   :  { %s1911_s0 = inlined_call_operand.hbm [shape: bf16[16,128], index: 0, kind: input, shape index: {}]   ;;  %s1912_s1 = inlined_call_operand.hbm [shape: bf16[128,128], index: 1, kind: input, shape index: {}]   ;;  %s1913_s2 = inlined_call_operand.vmem [shape: f32[1,128], index: 2, kind: input, shape index: {}]   ;;  %s1914_s3 = inlined_call_operand.hbm [shape: bf16[128,128], index: 3, kind: input, shape index: {}]   ;;  %s1915_s4 = inlined_call_operand.vmem [shape: f32[1,128], index: 4, kind: input, shape index: {}]   ;;  %s1916_s5 = inlined_call_operand.hbm [shape: bf16[128,128], index: 5, kind: input, shape index: {}]   ;;  %s1917_s6 = inlined_call_operand.vmem [shape: f32[1,128], index: 6, kind: input, shape index: {}]   ;;  %s1918_s7 = inlined_call_operand.hbm [shape: bf16[128,128], index: 7, kind: input, shape index: {}]   ;;  %s1919_s8 = inlined_call_operand.vmem [shape: f32[1,128], index: 8, kind: input, shape index: {}]   ;;  %s1920_s9 = inlined_call_operand.hbm [shape: f32[16,128], index: 9, kind: output, shape index: {}]  }
   0x1   :  { %1925 = sst [smem:[#allocation16_spill]] %s1912_s1 }
   0x2   :  { %1926 = sst [smem:[#allocation17_spill]] %s1920_s9 }
   0x3   :  { %14 = vsyncpa [#allocation3], 0 }
   0x4   :  { %16 = vsyncpa [#allocation3 + $0x1], 0 }
   0x5   :  { %17 = vsyncpa [#allocation6], 0 }
   0x6   :  { %18 = vsyncpa [#allocation9], 0 }
   0x7   :  { %19 = vsyncpa [#allocation4], 0 }
   0x8   :  { %21 = vsyncpa [#allocation4 + $0x1], 0  ;;  %s1563_s30 = smov 0   ;;  %s1565_s10 = smov 0  }
   0x9   :  { %s1567_s11 = smov 0   ;;  %s1569_s12 = smov 0  }
   0xa LB: > { %s1503_s13 = smov [#allocation5]   ;;  %s1584_s15 = sadd.s32 4294967295, %s1501_s12   ;;  %s1501_s12 = sphi %s1569_s12, %s1949_s12   ;;  %s1497_s11 = sphi %s1567_s11, %s1948_s11   ;;  %s1493_s10 = sphi %s1565_s10, %s1947_s10   ;;  %s1489_s30 = sphi %s1563_s30, %s1946_s30  }
   0xb   : > { %s264_s14 = sshll.u32 %s1503_s13, 4  ;;  %p989_p0 = scmp.ge.s32.totalorder %s1501_s12, 1  ;;  %s1589_s14 = int_to_ptr.vmem [resolvable:$true] %s264_s14 }
   0xc   : > { %p1922_p1 = scmp.eq.s32.totalorder %s1584_s15, 0  ;;  %p252_p2 = scmp.lt.s32.totalorder %s1501_s12, 3 }
   0xd   : > { %s1504_s17 = smov [#allocation8]   ;;  %s1505_s20 = smov [#allocation7]  }
   0xe   : > { %p1591_p3 = pnand %p989_p0, %p252_p2  ;;  %s296_s18 = sshll.u32 %s1504_s17, 4  ;;  %s1604_s18 = int_to_ptr.vmem [resolvable:$true] %s296_s18 }
   0xf   : > { %s280_s21 = sshll.u32 %s1505_s20, 4  ;;  %s1929_s1 = sld [smem:[#allocation16_spill]]  ;;  %s1606_s21 = int_to_ptr.vmem [resolvable:$true] %s280_s21 }
  0x10   : > { %s1927_s16 = scalar_select %p1591_p3, 1, 0 }
  0x11   : > { %p1180_p5 = pneg %p1591_p3 }
  0x13   : > { %p1600_p6 = pnand %p1180_p5, %p1922_p1 }
  0x15   : > { %s1285_s24 = scalar_lea.hbm %s1929_s1, 1024  ;;  %p1616_p8 = pneg %p1600_p6 }
  0x16   : > { %p1286_p7 = scmp.ne.s32.totalorder %s1929_s1, %s1285_s24  ;;  %p1292_p11 = scmp.lt.u32.totalorder %s1285_s24, %s1929_s1 }
  0x18   : > { %p1288_p9 = pnand %p1616_p8, %p1286_p7 }
  0x1a   : > { %p1289_p10 = pneg %p1288_p9 }
  0x1c   : > { %p1294_p12 = pnand %p1292_p11, %p1289_p10 }
  0x1e   : > { %1297 = shalt.err (!%p1294_p12)
}
  0x1f   : > { %s1298_s13 = scalar_lea.vmem %s1589_s14, 1024  ;;  %p1306_p5 = scmp.lt.s32.totalorder %s1589_s14, %s1589_s14 }
  0x20   : > { %p1299_p13 = scmp.ne.s32.totalorder %s1589_s14, %s1298_s13  ;;  %p1307_p4 = scmp.lt.s32.totalorder %s1298_s13, %s1298_s13 }
  0x22   : > { %p1301_p0 = pnand %p1299_p13, %p1616_p8  ;;  %p1308_p7 = por %p1307_p4, %p1306_p5 }
  0x24   : > { %p1302_p2 = pneg %p1301_p0 }
  0x26   : > { %p1309_p9 = pnand %p1308_p7, %p1302_p2 }
  0x28   : > { %1312 = shalt.err (!%p1309_p9)
}
  0x29   : > { %s1506_s17 = smov 64   ;;  %s1507_s20 = smov 4  }
  0x2a   : > { %1183 = dma.hbm_to_vmem [thread:$0]  (!%p1600_p6), %s1929_s1, 1024, %s1589_s14, [#allocation6], %s1506_s17, %s1506_s17, %s1507_s20  }
  0x2b   : > { %s1313_s26 = scalar_lea.hbm %s1916_s5, 1024 }
  0x2c   : > { %p1314_p4 = scmp.ne.s32.totalorder %s1916_s5, %s1313_s26  ;;  %p1320_p12 = scmp.lt.u32.totalorder %s1313_s26, %s1916_s5 }
  0x2e   : > { %p1316_p10 = pnand %p1314_p4, %p1616_p8 }
  0x30   : > { %p1317_p11 = pneg %p1316_p10 }
  0x32   : > { %p1322_p13 = pnand %p1320_p12, %p1317_p11 }
  0x34   : > { %1325 = shalt.err (!%p1322_p13)
}
  0x35   : > { %s1326_s14 = scalar_lea.vmem %s1604_s18, 1024  ;;  %p1334_p7 = scmp.lt.s32.totalorder %s1604_s18, %s1604_s18 }
  0x36   : > { %p1327_p0 = scmp.ne.s32.totalorder %s1604_s18, %s1326_s14  ;;  %p1335_p9 = scmp.lt.s32.totalorder %s1326_s14, %s1326_s14 }
  0x38   : > { %p1329_p2 = pnand %p1327_p0, %p1616_p8  ;;  %p1336_p4 = por %p1335_p9, %p1334_p7 }
  0x3a   : > { %p1330_p5 = pneg %p1329_p2 }
  0x3c   : > { %p1337_p10 = pnand %p1336_p4, %p1330_p5 }
  0x3e   : > { %1340 = shalt.err (!%p1337_p10)
}
  0x3f   : > { %1189 = dma.hbm_to_vmem [thread:$0]  (!%p1600_p6), %s1916_s5, 1024, %s1604_s18, [#allocation9], %s1506_s17, %s1506_s17, %s1507_s20  }
  0x40   : > { %s1341_s25 = scalar_lea.hbm %s1914_s3, 1024 }
  0x41   : > { %p1342_p11 = scmp.ne.s32.totalorder %s1914_s3, %s1341_s25  ;;  %p1348_p0 = scmp.lt.u32.totalorder %s1341_s25, %s1914_s3 }
  0x43   : > { %p1344_p12 = pnand %p1342_p11, %p1616_p8 }
  0x45   : > { %p1345_p13 = pneg %p1344_p12 }
  0x47   : > { %p1350_p2 = pnand %p1348_p0, %p1345_p13 }
  0x49   : > { %1353 = shalt.err (!%p1350_p2)
}
  0x4a   : > { %s1354_s18 = scalar_lea.vmem %s1606_s21, 1024  ;;  %p1362_p4 = scmp.lt.s32.totalorder %s1606_s21, %s1606_s21 }
  0x4b   : > { %p1355_p5 = scmp.ne.s32.totalorder %s1606_s21, %s1354_s18  ;;  %p1363_p10 = scmp.lt.s32.totalorder %s1354_s18, %s1354_s18 }
  0x4d   : > { %p1357_p7 = pnand %p1355_p5, %p1616_p8  ;;  %p1364_p11 = por %p1363_p10, %p1362_p4 }
  0x4f   : > { %p1358_p9 = pneg %p1357_p7 }
  0x51   : > { %p1365_p12 = pnand %p1364_p11, %p1358_p9 }
  0x53   : > { %1368 = shalt.err (!%p1365_p12)
}
  0x54   : > { %1186 = dma.hbm_to_vmem [thread:$0]  (!%p1600_p6), %s1914_s3, 1024, %s1606_s21, [#allocation6], %s1506_s17, %s1506_s17, %s1507_s20  }
  0x55   : > { %s1508_s22 = smov [#allocation10]   ;;  %s1369_s26 = scalar_lea.hbm %s1918_s7, 1024 }
  0x56   : > { %s312_s23 = sshll.u32 %s1508_s22, 4  ;;  %p1370_p13 = scmp.ne.s32.totalorder %s1918_s7, %s1369_s26  ;;  %s313_s23 = int_to_ptr.vmem [resolvable:$true] %s312_s23 }
  0x57   : > { %p1376_p5 = scmp.lt.u32.totalorder %s1369_s26, %s1918_s7 }
  0x58   : > { %p1372_p0 = pnand %p1370_p13, %p1616_p8 }
  0x5a   : > { %p1373_p2 = pneg %p1372_p0 }
  0x5c   : > { %p1378_p7 = pnand %p1376_p5, %p1373_p2 }
  0x5e   : > { %1381 = shalt.err (!%p1378_p7)
}
  0x5f   : > { %s1382_s21 = scalar_lea.vmem %s313_s23, 1024  ;;  %p1390_p11 = scmp.lt.s32.totalorder %s313_s23, %s313_s23 }
  0x60   : > { %p1383_p9 = scmp.ne.s32.totalorder %s313_s23, %s1382_s21  ;;  %p1391_p12 = scmp.lt.s32.totalorder %s1382_s21, %s1382_s21 }
  0x62   : > { %p1385_p4 = pnand %p1383_p9, %p1616_p8  ;;  %p1392_p1 = por %p1391_p12, %p1390_p11 }
  0x64   : > { %p1386_p10 = pneg %p1385_p4 }
  0x66   : > { %p1393_p3 = pnand %p1392_p1, %p1386_p10 }
  0x68   : > { %1396 = shalt.err (!%p1393_p3)
}
  0x69   : > { %1192 = dma.hbm_to_vmem [thread:$0]  (!%p1600_p6), %s1918_s7, 1024, %s313_s23, [#allocation9], %s1506_s17, %s1506_s17, %s1507_s20  }
  0x6a   : > { %s988_s19 = sadd.s32 4294967294, %s1501_s12   ;;  %s1715_s27 = sadd.s32 1, %s1501_s12  }
  0x6b   : > { %s31_s22 = ssub.s32 %s1501_s12, %s1715_s27  ;;  %s34_s24 = sadd.s32 1, %s1497_s11 }
  0x6c   : > { %p32_p1 = scmp.eq.s32.totalorder %s31_s22, 0  ;;  %p41_p3 = scmp.ne.s32.totalorder %s1497_s11, %s1493_s10 }
  0x6d   : > { %p42_p8 = scmp.eq.s32.totalorder %s1501_s12, 0  ;;  %p47_p13 = scmp.ne.s32.totalorder %s1493_s10, %s1489_s30 }
  0x6e   : > { %s1726_s25 = scalar_select %p32_p1, %s1497_s11, %s34_s24  }
  0x6f   : > { %p1728_p0 = por %p42_p8, %p41_p3  ;;  %p1932_p2 = scmp.eq.s32.totalorder %s1584_s15, 0 }
  0x70   : > { %p239_p5 = scmp.eq.s32.totalorder %s1584_s15, 1  ;;  %p245_p7 = scmp.eq.s32.totalorder %s988_s19, 1 }
  0x71   : > { %p1734_p6 = por %p1932_p2, %p47_p13  ;;  %p1205_p9 = scmp.lt.s32.totalorder %s1501_s12, 2 }
  0x72   : > { %s329_s20 = sand.u32 1, %s1497_s11   ;;  %p1741_p4 = por %p239_p5, %p41_p3 }
  0x73   : > { %p1745_p10 = por %p245_p7, %p47_p13  ;;  %s995_s29 = sshll.u32 %s329_s20, 2 }
  0x74   : > { %s1934_s23 = scalar_select %p1741_p4, 1, 0 }
  0x75   : > { %s1935_s28 = scalar_select %p1745_p10, 1, 0 }
  0x76   : > { %s996_s13 = sshll.u32 %s1501_s12, 6  ;;  %s333_s9 = scalar_lea.vmem [#allocation2], %s995_s29 }
  0x77   : > { %s1753_s14 = scalar_lea.hbm %s1911_s0, %s996_s13  ;;  %s340_s19 = sshll.u32 %s333_s9, 4  ;;  %s1755_s19 = int_to_ptr.vmem [resolvable:$true] %s340_s19 }
  0x78   : > { %p1759_p11 = pnand %p1205_p9, %p1728_p0  ;;  %s330_s24 = scalar_lea.sflag [#allocation3], %s329_s20 }
  0x79   : > { %s1397_s1 = scalar_lea.hbm %s1753_s14, 64  ;;  %s1402_s18 = scalar_lea.hbm %s1911_s0, 128 }
  0x7a   : > { %p1398_p12 = scmp.ne.s32.totalorder %s1753_s14, %s1397_s1  ;;  %p1399_p1 = pneg %p1759_p11 }
  0x7b   : > { %p1403_p13 = scmp.lt.u32.totalorder %s1753_s14, %s1911_s0  ;;  %p1404_p0 = scmp.lt.u32.totalorder %s1402_s18, %s1397_s1 }
  0x7c   : > { %p1400_p3 = pnand %p1399_p1, %p1398_p12  ;;  %p1406_p5 = scmp.lt.u32.totalorder %s1397_s1, %s1753_s14 }
  0x7d   : > { %p1405_p2 = por %p1404_p0, %p1403_p13 }
  0x7e   : > { %p1401_p8 = pneg %p1400_p3 }
  0x7f   : > { %p1407_p7 = por %p1406_p5, %p1405_p2 }
  0x81   : > { %p1408_p9 = pnand %p1407_p7, %p1401_p8 }
  0x83   : > { %1411 = shalt.err (!%p1408_p9)
}
  0x84   : > { %s1412_s20 = scalar_lea.vmem %s1755_s19, 64  ;;  %s1509_s9 = smov [#allocation2]  }
  0x85   : > { %p1413_p12 = scmp.ne.s32.totalorder %s1755_s19, %s1412_s20  ;;  %s1417_s29 = sshll.u32 %s1509_s9, 4  ;;  %s1418_s29 = int_to_ptr.vmem [resolvable:$false] %s1417_s29 }
  0x86   : > { %s1419_s13 = scalar_lea.vmem %s1418_s29, 128  ;;  %p1420_p4 = scmp.lt.s32.totalorder %s1755_s19, %s1418_s29 }
  0x87   : > { %p1415_p3 = pnand %p1413_p12, %p1399_p1  ;;  %p1421_p13 = scmp.lt.s32.totalorder %s1419_s13, %s1412_s20 }
  0x89   : > { %p1416_p10 = pneg %p1415_p3  ;;  %p1422_p0 = por %p1421_p13, %p1420_p4 }
  0x8b   : > { %p1423_p2 = pnand %p1422_p0, %p1416_p10 }
  0x8d   : > { %1426 = shalt.err (!%p1423_p2)
}
  0x8e   : > { %1196 = dma.hbm_to_vmem [thread:$0]  (!%p1759_p11), %s1753_s14, 64, %s1755_s19, %s330_s24  }
  0x8f   : > { %p1937_p8 = scmp.ne.s32.totalorder %s1927_s16, 0 }
  0x90   : > { %s1791_s1 = sand.u32 (!%p1937_p8), 1, %s1493_s10  }
  0x91   : > { %349 = sbr.rel (%p1937_p8) target bundleno = 1089 (0x441), region = 56  ;;  %s998_s18 = sshll.u32 (!%p1937_p8), %s1791_s1, 2 }
  0x92   : > { %s352_s26 = scalar_lea.sflag (!%p1937_p8), [#allocation3], %s1791_s1  ;;  %s1795_s21 = scalar_lea.vmem (!%p1937_p8), [#allocation2], %s998_s18 }
  0x98   : > { %1472 = dma.done.wait (%p1734_p6), %s352_s26, 64  }
  0x99   : > { %1474 = vsyncadd (%p1734_p6), %s352_s26, 4294967232  ;;  %p1938_p4 = scmp.eq.s32.totalorder %s1584_s15, 0 }
  0x9b   : > { %1476 = dma.done.wait (%p1938_p4), [#allocation6], 2048   ;;  %p1939_p10 = pmov %p1938_p4 }
  0x9c   : > { %p1940_p11 = pmov %p1938_p4 }
  0x9d   : > { %1478 = vsyncadd (%p1939_p10), [#allocation6], 4294965248 }
  0x9e   : > { %1480 = dma.done.wait (%p1940_p11), [#allocation9], 2048   ;;  %p1941_p1 = pmov %p1938_p4 }
  0x9f   : > { %v1510_v0 = vmov 0.0   ;;  %vm1511_vm0 = vmmov 0   ;;  %v1251_v1 = vld [vmem:[#allocation5] sm:$0xff]   ;;  %v1252_v2 = vld [vmem:[#allocation5 + $0x8] sm:$0xff]   ;;  %v1253_v3 = vld [vmem:[#allocation5 + $0x10] sm:$0xff]   ;;  %s1003_s29 = sshll.u32 %s1791_s1, 3 }
  0xa0   : > { %1482 = vsyncadd (%p1941_p1), [#allocation9], 4294965248  ;;  %1080 = vmatprep.subr.bf16.mxu0 %v1510_v0  ;;  %1096 = vmatprep.mubr.msk.bf16.mxu0 %vm1511_vm0, %v1510_v0  ;;  %v1259_v4 = vld [vmem:[#allocation7] sm:$0xff]   ;;  %v1254_v5 = vld [vmem:[#allocation5 + $0x18] sm:$0xff]   ;;  %s1041_s13 = sshll.u32 %s1584_s15, 7  ;;  %s405_s18 = scalar_lea.vmem [#allocation11], %s1003_s29 }
  0xa1   : > { %1100 = vmatprep.subr.bf16.mxu1 %v1510_v0  ;;  %1116 = vmatprep.mubr.msk.bf16.mxu1 %vm1511_vm0, %v1510_v0  ;;  %v1260_v6 = vld [vmem:[#allocation7 + $0x8] sm:$0xff]   ;;  %v1255_v7 = vld [vmem:[#allocation5 + $0x20] sm:$0xff]   ;;  %v1261_v8 = vld [vmem:[#allocation7 + $0x10] sm:$0xff]   ;;  %s880_s26 = sshll.u32 %s405_s18, 4  ;;  %s1942_s17 = sld [smem:[#allocation17_spill]]  ;;  %s1869_s26 = int_to_ptr.vmem [resolvable:$true] %s880_s26 }
  0xa2   : > { %1081 = vmatpush3.bf16.msra.mxu0 %v1251_v1  ;;  %1101 = vmatpush3.bf16.msra.mxu1 %v1259_v4  ;;  %v1256_v9 = vld [vmem:[#allocation5 + $0x28] sm:$0xff]   ;;  %v1262_v10 = vld [vmem:[#allocation7 + $0x18] sm:$0xff]   ;;  %v1257_v11 = vld [vmem:[#allocation5 + $0x30] sm:$0xff]   ;;  %s867_s19 = scalar_lea.sflag [#allocation4], %s1791_s1  ;;  %s1427_s22 = scalar_lea.vmem %s1869_s26, 128 }
  0xa3   : > { %1082 = vmatprep.subr.bf16.mxu0 %v1510_v0  ;;  %1102 = vmatprep.subr.bf16.mxu1 %v1510_v0  ;;  %v1263_v12 = vld [vmem:[#allocation7 + $0x20] sm:$0xff]   ;;  %v1258_v13 = vld [vmem:[#allocation5 + $0x38] sm:$0xff]   ;;  %v1264_v14 = vld [vmem:[#allocation7 + $0x28] sm:$0xff]   ;;  %p1428_p6 = scmp.ne.s32.totalorder %s1869_s26, %s1427_s22  ;;  %p1943_p5 = scmp.ne.s32.totalorder %s1934_s23, 0 }
  0xa4   : > { %v407_v15 = vld [vmem:[%s1795_s21] sm:$0xf]  ;;  %v1265_v16 = vld [vmem:[#allocation7 + $0x30] sm:$0xff]   ;;  %v1267_v18 = vld [vmem:[#allocation8] sm:$0xff]   ;;  %s1512_s15 = smov [#allocation11]  }
  0xa5   : > { %v1266_v17 = vld [vmem:[#allocation7 + $0x38] sm:$0xff]   ;;  %v1268_v19 = vld [vmem:[#allocation8 + $0x8] sm:$0xff]   ;;  %v1269_v20 = vld [vmem:[#allocation8 + $0x10] sm:$0xff]   ;;  %p1429_p7 = pnand %p1428_p6, %p1943_p5  ;;  %s1431_s24 = sshll.u32 %s1512_s15, 4  ;;  %s1432_s24 = int_to_ptr.vmem [resolvable:$false] %s1431_s24 }
  0xa6   : > { %1083 = vmatpush3.bf16.msra.mxu0 %v1252_v2  ;;  %1103 = vmatpush3.bf16.msra.mxu1 %v1260_v6  ;;  %v1270_v21 = vld [vmem:[#allocation8 + $0x18] sm:$0xff]   ;;  %v1271_v22 = vld [vmem:[#allocation8 + $0x20] sm:$0xff]   ;;  %v1272_v23 = vld [vmem:[#allocation8 + $0x28] sm:$0xff]   ;;  %s1433_s20 = scalar_lea.vmem %s1432_s24, 256  ;;  %p1434_p12 = scmp.lt.s32.totalorder %s1869_s26, %s1432_s24 }
  0xa7   : > { %1084 = vmatprep.subr.bf16.mxu0 %v1510_v0  ;;  %1104 = vmatprep.subr.bf16.mxu1 %v1510_v0  ;;  %v1004_v24 = vld [vmem:[%s1913_s2] ss:$0 sm:$0xff]  ;;  %v1273_v33 = vld [vmem:[#allocation8 + $0x30] sm:$0xff]   ;;  %v1275_v35 = vld [vmem:[#allocation10] sm:$0xff]   ;;  %s1867_s14 = scalar_lea.hbm %s1942_s17, %s1041_s13  ;;  %p1430_p9 = pneg %p1429_p7 }
  0xa8   : > { %v1274_v34 = vld [vmem:[#allocation8 + $0x38] sm:$0xff]   ;;  %v1276_v36 = vld [vmem:[#allocation10 + $0x8] sm:$0xff]   ;;  %v1277_v37 = vld [vmem:[#allocation10 + $0x10] sm:$0xff]   ;;  %p1435_p3 = scmp.lt.s32.totalorder %s1433_s20, %s1427_s22 }
  0xa9   : > { %v1278_v38 = vld [vmem:[#allocation10 + $0x18] sm:$0xff]   ;;  %v1279_v39 = vld [vmem:[#allocation10 + $0x20] sm:$0xff]   ;;  %v1280_v40 = vld [vmem:[#allocation10 + $0x28] sm:$0xff]  }
  0xaa   : > { %1085 = vmatpush3.bf16.msra.mxu0 %v1253_v3  ;;  %1105 = vmatpush3.bf16.msra.mxu1 %v1261_v8  ;;  %v1013_v41 = vld [vmem:[%s1915_s4] ss:$0 sm:$0xff]  ;;  %v1281_v50 = vld [vmem:[#allocation10 + $0x30] sm:$0xff]   ;;  %p1436_p13 = por %p1435_p3, %p1434_p12 }
  0xab   : > { %1086 = vmatprep.subr.bf16.mxu0 %v1510_v0  ;;  %1106 = vmatprep.subr.bf16.mxu1 %v1510_v0  ;;  %v1282_v51 = vld [vmem:[#allocation10 + $0x38] sm:$0xff]  }
  0xac   : > { %v1022_v52 = vld [vmem:[%s1917_s6] ss:$0 sm:$0xff]  ;;  %p1437_p0 = pnand %p1436_p13, %p1430_p9 }
  0xad   : > { %v1031_v61 = vld [vmem:[%s1919_s8] ss:$0 sm:$0xff] }
  0xae   : > { %1087 = vmatpush3.bf16.msra.mxu0 %v1254_v5  ;;  %1107 = vmatpush3.bf16.msra.mxu1 %v1262_v10 }
  0xaf   : > { %1088 = vmatprep.subr.bf16.mxu0 %v1510_v0  ;;  %1108 = vmatprep.subr.bf16.mxu1 %v1510_v0 }
  0xb2   : > { %1089 = vmatpush3.bf16.msra.mxu0 %v1255_v7  ;;  %1109 = vmatpush3.bf16.msra.mxu1 %v1263_v12 }
  0xb3   : > { %1090 = vmatprep.subr.bf16.mxu0 %v1510_v0  ;;  %1110 = vmatprep.subr.bf16.mxu1 %v1510_v0 }
  0xb6   : > { %1091 = vmatpush3.bf16.msra.mxu0 %v1256_v9  ;;  %1111 = vmatpush3.bf16.msra.mxu1 %v1264_v14 }
  0xb7   : > { %1092 = vmatprep.subr.bf16.mxu0 %v1510_v0  ;;  %1112 = vmatprep.subr.bf16.mxu1 %v1510_v0 }
  0xba   : > { %1093 = vmatpush3.bf16.msra.mxu0 %v1257_v11  ;;  %1113 = vmatpush3.bf16.msra.mxu1 %v1265_v16 }
  0xbb   : > { %1094 = vmatprep.subr.bf16.mxu0 %v1510_v0  ;;  %1114 = vmatprep.subr.bf16.mxu1 %v1510_v0 }
  0xbe   : > { %1095 = vmatpush3.bf16.msra.mxu0 %v1258_v13  ;;  %1115 = vmatpush3.bf16.msra.mxu1 %v1266_v17 }
  0xbf   : > { %1120 = vmatprep.subr.bf16.mxu0 %v1510_v0  ;;  %1140 = vmatprep.subr.bf16.mxu1 %v1510_v0 }
  0xc1   : > { %1097 = vmatmul.mubr.bf16.vlgmr.msra.gmra.mrb[0].mxu0 %v407_v15 }
  0xc2   : > { %1136 = vmatprep.mubr.msk.bf16.mxu0 %vm1511_vm0, %v1510_v0  ;;  %1121 = vmatpush3.bf16.msra.mxu0 %v1267_v18 }
  0xc3   : > { %1122 = vmatprep.subr.bf16.mxu0 %v1510_v0 }
  0xc6   : > { %1123 = vmatpush3.bf16.msra.mxu0 %v1268_v19 }
  0xc7   : > { %1124 = vmatprep.subr.bf16.mxu0 %v1510_v0 }
  0xca   : > { %1125 = vmatpush3.bf16.msra.mxu0 %v1269_v20 }
  0xcb   : > { %1126 = vmatprep.subr.bf16.mxu0 %v1510_v0 }
  0xce   : > { %1127 = vmatpush3.bf16.msra.mxu0 %v1270_v21 }
  0xcf   : > { %1128 = vmatprep.subr.bf16.mxu0 %v1510_v0 }
  0xd2   : > { %1129 = vmatpush3.bf16.msra.mxu0 %v1271_v22 }
  0xd3   : > { %1130 = vmatprep.subr.bf16.mxu0 %v1510_v0 }
  0xd6   : > { %1131 = vmatpush3.bf16.msra.mxu0 %v1272_v23 }
  0xd7   : > { %1132 = vmatprep.subr.bf16.mxu0 %v1510_v0 }
  0xda   : > { %1133 = vmatpush3.bf16.msra.mxu0 %v1273_v33 }
  0xdb   : > { %1134 = vmatprep.subr.bf16.mxu0 %v1510_v0 }
  0xde   : > { %1135 = vmatpush3.bf16.msra.mxu0 %v1274_v34 }
 0x194   : > { %v513_v25 = vpop.f32.mrb[0].mxu0 }
 0x195   : > { %v514_v26 = vadd.f32 %v1004_v24, %v513_v25  ;;  %v1098_v27 = vpop.f32.mrb[1].mxu0 }
 0x196   : > { %v516_v28 = vpop.f32.mrb[2].mxu0 }
 0x197   : > { %vm519_vm1 = vcmp.gt.f32.partialorder %v514_v26, 0.0  ;;  %v520_v29 = vmul.f32 0.2, %v514_v26  ;;  %v1099_v30 = vpop.f32.mrb[3].mxu0 }
 0x199   : > { %v521_v31 = vsel %vm519_vm1, %v514_v26, %v520_v29 }
 0x19a   : > { %v522_v32 = vpack.c.bf16 %v521_v31, %v521_v31 }
 0x19c   : > { %1117 = vmatmul.mubr.bf16.vlgmr.msra.gmra.mrb[0].mxu1 %v522_v32 }
 0x19d   : > { %1156 = vmatprep.mubr.msk.bf16.mxu1 %vm1511_vm0, %v1510_v0  ;;  %1141 = vmatpush3.bf16.msra.mxu1 %v1275_v35 }
 0x19e   : > { %1142 = vmatprep.subr.bf16.mxu1 %v1510_v0 }
 0x1a1   : > { %1143 = vmatpush3.bf16.msra.mxu1 %v1276_v36 }
 0x1a2   : > { %1144 = vmatprep.subr.bf16.mxu1 %v1510_v0 }
 0x1a5   : > { %1145 = vmatpush3.bf16.msra.mxu1 %v1277_v37 }
 0x1a6   : > { %1146 = vmatprep.subr.bf16.mxu1 %v1510_v0 }
 0x1a9   : > { %1147 = vmatpush3.bf16.msra.mxu1 %v1278_v38 }
 0x1aa   : > { %1148 = vmatprep.subr.bf16.mxu1 %v1510_v0 }
 0x1ad   : > { %1149 = vmatpush3.bf16.msra.mxu1 %v1279_v39 }
 0x1ae   : > { %1150 = vmatprep.subr.bf16.mxu1 %v1510_v0 }
 0x1b1   : > { %1151 = vmatpush3.bf16.msra.mxu1 %v1280_v40 }
 0x1b2   : > { %1152 = vmatprep.subr.bf16.mxu1 %v1510_v0 }
 0x1b5   : > { %1153 = vmatpush3.bf16.msra.mxu1 %v1281_v50 }
 0x1b6   : > { %1154 = vmatprep.subr.bf16.mxu1 %v1510_v0 }
 0x1b9   : > { %1155 = vmatpush3.bf16.msra.mxu1 %v1282_v51 }
 0x26f   : > { %v628_v42 = vpop.f32.mrb[0].mxu1 }
 0x270   : > { %v629_v43 = vadd.f32 %v1013_v41, %v628_v42  ;;  %v1118_v44 = vpop.f32.mrb[1].mxu1 }
 0x271   : > { %v631_v45 = vpop.f32.mrb[2].mxu1 }
 0x272   : > { %vm634_vm2 = vcmp.gt.f32.partialorder %v629_v43, 0.0  ;;  %v635_v46 = vmul.f32 0.2, %v629_v43  ;;  %v1119_v47 = vpop.f32.mrb[3].mxu1 }
 0x274   : > { %v636_v48 = vsel %vm634_vm2, %v629_v43, %v635_v46 }
 0x275   : > { %v637_v49 = vpack.c.bf16 %v636_v48, %v636_v48 }
 0x277   : > { %1137 = vmatmul.mubr.bf16.vlgmr.msra.gmra.mrb[4].mxu0 %v637_v49 }
 0x34a   : > { %v743_v53 = vpop.f32.mrb[4].mxu0 }
 0x34b   : > { %v744_v54 = vadd.f32 %v1022_v52, %v743_v53  ;;  %v1138_v55 = vpop.f32.mrb[5].mxu0 }
 0x34c   : > { %v746_v56 = vpop.f32.mrb[6].mxu0 }
 0x34d   : > { %vm749_vm3 = vcmp.gt.f32.partialorder %v744_v54, 0.0  ;;  %v750_v57 = vmul.f32 0.2, %v744_v54  ;;  %v1139_v58 = vpop.f32.mrb[7].mxu0 }
 0x34f   : > { %v751_v59 = vsel %vm749_vm3, %v744_v54, %v750_v57 }
 0x350   : > { %v752_v60 = vpack.c.bf16 %v751_v59, %v751_v59 }
 0x352   : > { %1157 = vmatmul.mubr.bf16.vlgmr.msra.gmra.mrb[4].mxu1 %v752_v60 }
 0x425   : > { %v858_v62 = vpop.f32.mrb[4].mxu1 }
 0x426   : > { %v859_v63 = vadd.f32 %v1031_v61, %v858_v62  ;;  %v1158_v0 = vpop.f32.mrb[5].mxu1 }
 0x427   : > { %v861_v1 = vpop.f32.mrb[6].mxu1 }
 0x428   : > { %1283 = vtanh.f32 %v859_v63  ;;  %v1159_v2 = vpop.f32.mrb[7].mxu1 }
 0x432   : > { %v1284_v3 = vpop.eup %1283 }
 0x433   : > { %865 = vst [vmem:[%s405_s18] sm:$0xff] %v1284_v3 }
 0x434   : > { %1440 = shalt.err (!%p1437_p0)
}
 0x435   : > { %s1441_s1 = scalar_lea.hbm %s1867_s14, 128  ;;  %s1445_s13 = scalar_lea.hbm %s1942_s17, 256 }
 0x436   : > { %p1442_p2 = scmp.ne.s32.totalorder %s1867_s14, %s1441_s1  ;;  %p1446_p10 = scmp.lt.u32.totalorder %s1867_s14, %s1942_s17 }
 0x437   : > { %p1447_p11 = scmp.lt.u32.totalorder %s1445_s13, %s1441_s1  ;;  %p1449_p6 = scmp.lt.u32.totalorder %s1441_s1, %s1867_s14 }
 0x438   : > { %p1443_p8 = pnand %p1442_p2, %p1943_p5 }
 0x439   : > { %p1448_p1 = por %p1447_p11, %p1446_p10 }
 0x43a   : > { %p1444_p4 = pneg %p1443_p8 }
 0x43b   : > { %p1450_p7 = por %p1449_p6, %p1448_p1 }
 0x43d   : > { %p1451_p9 = pnand %p1450_p7, %p1444_p4 }
 0x43f   : > { %1454 = shalt.err (!%p1451_p9)
}
 0x440   : > { %1178 = dma.vmem_to_hbm [thread:$0]  (%p1943_p5), %s1869_s26, 128, %s1867_s14, %s867_s19  }
 0x441 PF: > { %s892_s16 = sand.u32 1, %s1489_s30   ;;  %p1944_p12 = scmp.ne.s32.totalorder %s1935_s28, 0 }
 0x442   : > { %p1945_p3 = scmp.ge.s32.totalorder %s1501_s12, 2  ;;  %s893_s22 = scalar_lea.sflag [#allocation4], %s892_s16 }
 0x444   : > { %p1198_p13 = pnand %p1945_p3, %p1944_p12 }
 0x446   : > { %1484 = dma.done.wait (!%p1198_p13), %s893_s22, 128  }
 0x447   : > { %1486 = vsyncadd (!%p1198_p13), %s893_s22, 4294967168  ;;  %p24_p0 = scmp.ge.s32.totalorder %s1715_s27, 4   ;;  %s1946_s30 = smov %s1493_s10 }
 0x448   : > { %s1947_s10 = smov %s1497_s11  ;;  %s1948_s11 = smov %s1726_s25 }
 0x449   : > { %s1949_s12 = smov %s1715_s27  ;;  %26 = sbr.rel (!%p24_p0) target bundleno = 10 (0xa), region = 117 }
 0x450   :  { %898 = vsyncpa [#allocation3], 1 }
 0x451   :  { %900 = vsyncpa [#allocation3 + $0x1], 1 }
 0x452   :  { %901 = vsyncpa [#allocation6], 1 }
 0x453   :  { %902 = vsyncpa [#allocation9], 1 }
 0x454   :  { %903 = vsyncpa [#allocation4], 1 }
 0x455   :  { %905 = vsyncpa [#allocation4 + $0x1], 1 }

// kernel: tpu_custom_call.1
= control target key start
LH: loop header
LB: loop body
LE: loop exit
PB: predicated region body
PF: predicated region fallthrough
CT: control target
= control target key end

     0   :  { %s1911_s0 = inlined_call_operand.hbm [shape: bf16[16,128], index: 0, kind: input, shape index: {}]   ;;  %s1912_s1 = inlined_call_operand.hbm [shape: bf16[128,128], index: 1, kind: input, shape index: {}]   ;;  %s1913_s2 = inlined_call_operand.vmem [shape: f32[1,128], index: 2, kind: input, shape index: {}]   ;;  %s1914_s3 = inlined_call_operand.hbm [shape: bf16[128,128], index: 3, kind: input, shape index: {}]   ;;  %s1915_s4 = inlined_call_operand.vmem [shape: f32[1,128], index: 4, kind: input, shape index: {}]   ;;  %s1916_s5 = inlined_call_operand.hbm [shape: bf16[128,128], index: 5, kind: input, shape index: {}]   ;;  %s1917_s6 = inlined_call_operand.vmem [shape: f32[1,128], index: 6, kind: input, shape index: {}]   ;;  %s1918_s7 = inlined_call_operand.hbm [shape: bf16[128,128], index: 7, kind: input, shape index: {}]   ;;  %s1919_s8 = inlined_call_operand.vmem [shape: f32[1,128], index: 8, kind: input, shape index: {}]   ;;  %s1920_s9 = inlined_call_operand.hbm [shape: f32[16,128], index: 9, kind: output, shape index: {}]  }
   0x1   :  { %1925 = sst [smem:[#allocation16_spill]] %s1912_s1 }
   0x2   :  { %1926 = sst [smem:[#allocation17_spill]] %s1920_s9 }
   0x3   :  { %14 = vsyncpa [#allocation3], 0 }
   0x4   :  { %16 = vsyncpa [#allocation3 + $0x1], 0 }
   0x5   :  { %17 = vsyncpa [#allocation6], 0 }
   0x6   :  { %18 = vsyncpa [#allocation9], 0 }
   0x7   :  { %19 = vsyncpa [#allocation4], 0 }
   0x8   :  { %21 = vsyncpa [#allocation4 + $0x1], 0  ;;  %s1563_s30 = smov 0   ;;  %s1565_s10 = smov 0  }
   0x9   :  { %s1567_s11 = smov 0   ;;  %s1569_s12 = smov 0  }
   0xa LB: > { %s1503_s13 = smov [#allocation5]   ;;  %s1584_s15 = sadd.s32 4294967295, %s1501_s12   ;;  %s1501_s12 = sphi %s1569_s12, %s1949_s12   ;;  %s1497_s11 = sphi %s1567_s11, %s1948_s11   ;;  %s1493_s10 = sphi %s1565_s10, %s1947_s10   ;;  %s1489_s30 = sphi %s1563_s30, %s1946_s30  }
   0xb   : > { %s264_s14 = sshll.u32 %s1503_s13, 4  ;;  %p989_p0 = scmp.ge.s32.totalorder %s1501_s12, 1  ;;  %s1589_s14 = int_to_ptr.vmem [resolvable:$true] %s264_s14 }
   0xc   : > { %p1922_p1 = scmp.eq.s32.totalorder %s1584_s15, 0  ;;  %p252_p2 = scmp.lt.s32.totalorder %s1501_s12, 3 }
   0xd   : > { %s1504_s17 = smov [#allocation8]   ;;  %s1505_s20 = smov [#allocation7]  }
   0xe   : > { %p1591_p3 = pnand %p989_p0, %p252_p2  ;;  %s296_s18 = sshll.u32 %s1504_s17, 4  ;;  %s1604_s18 = int_to_ptr.vmem [resolvable:$true] %s296_s18 }
   0xf   : > { %s280_s21 = sshll.u32 %s1505_s20, 4  ;;  %s1929_s1 = sld [smem:[#allocation16_spill]]  ;;  %s1606_s21 = int_to_ptr.vmem [resolvable:$true] %s280_s21 }
  0x10   : > { %s1927_s16 = scalar_select %p1591_p3, 1, 0 }
  0x11   : > { %p1180_p5 = pneg %p1591_p3 }
  0x13   : > { %p1600_p6 = pnand %p1180_p5, %p1922_p1 }
  0x15   : > { %s1285_s24 = scalar_lea.hbm %s1929_s1, 1024  ;;  %p1616_p8 = pneg %p1600_p6 }
  0x16   : > { %p1286_p7 = scmp.ne.s32.totalorder %s1929_s1, %s1285_s24  ;;  %p1292_p11 = scmp.lt.u32.totalorder %s1285_s24, %s1929_s1 }
  0x18   : > { %p1288_p9 = pnand %p1616_p8, %p1286_p7 }
  0x1a   : > { %p1289_p10 = pneg %p1288_p9 }
  0x1c   : > { %p1294_p12 = pnand %p1292_p11, %p1289_p10 }
  0x1e   : > { %1297 = shalt.err (!%p1294_p12)
}
  0x1f   : > { %s1298_s13 = scalar_lea.vmem %s1589_s14, 1024  ;;  %p1306_p5 = scmp.lt.s32.totalorder %s1589_s14, %s1589_s14 }
  0x20   : > { %p1299_p13 = scmp.ne.s32.totalorder %s1589_s14, %s1298_s13  ;;  %p1307_p4 = scmp.lt.s32.totalorder %s1298_s13, %s1298_s13 }
  0x22   : > { %p1301_p0 = pnand %p1299_p13, %p1616_p8  ;;  %p1308_p7 = por %p1307_p4, %p1306_p5 }
  0x24   : > { %p1302_p2 = pneg %p1301_p0 }
  0x26   : > { %p1309_p9 = pnand %p1308_p7, %p1302_p2 }
  0x28   : > { %1312 = shalt.err (!%p1309_p9)
}
  0x29   : > { %s1506_s17 = smov 64   ;;  %s1507_s20 = smov 4  }
  0x2a   : > { %1183 = dma.hbm_to_vmem [thread:$0]  (!%p1600_p6), %s1929_s1, 1024, %s1589_s14, [#allocation6], %s1506_s17, %s1506_s17, %s1507_s20  }
  0x2b   : > { %s1313_s26 = scalar_lea.hbm %s1916_s5, 1024 }
  0x2c   : > { %p1314_p4 = scmp.ne.s32.totalorder %s1916_s5, %s1313_s26  ;;  %p1320_p12 = scmp.lt.u32.totalorder %s1313_s26, %s1916_s5 }
  0x2e   : > { %p1316_p10 = pnand %p1314_p4, %p1616_p8 }
  0x30   : > { %p1317_p11 = pneg %p1316_p10 }
  0x32   : > { %p1322_p13 = pnand %p1320_p12, %p1317_p11 }
  0x34   : > { %1325 = shalt.err (!%p1322_p13)
}
  0x35   : > { %s1326_s14 = scalar_lea.vmem %s1604_s18, 1024  ;;  %p1334_p7 = scmp.lt.s32.totalorder %s1604_s18, %s1604_s18 }
  0x36   : > { %p1327_p0 = scmp.ne.s32.totalorder %s1604_s18, %s1326_s14  ;;  %p1335_p9 = scmp.lt.s32.totalorder %s1326_s14, %s1326_s14 }
  0x38   : > { %p1329_p2 = pnand %p1327_p0, %p1616_p8  ;;  %p1336_p4 = por %p1335_p9, %p1334_p7 }
  0x3a   : > { %p1330_p5 = pneg %p1329_p2 }
  0x3c   : > { %p1337_p10 = pnand %p1336_p4, %p1330_p5 }
  0x3e   : > { %1340 = shalt.err (!%p1337_p10)
}
  0x3f   : > { %1189 = dma.hbm_to_vmem [thread:$0]  (!%p1600_p6), %s1916_s5, 1024, %s1604_s18, [#allocation9], %s1506_s17, %s1506_s17, %s1507_s20  }
  0x40   : > { %s1341_s25 = scalar_lea.hbm %s1914_s3, 1024 }
  0x41   : > { %p1342_p11 = scmp.ne.s32.totalorder %s1914_s3, %s1341_s25  ;;  %p1348_p0 = scmp.lt.u32.totalorder %s1341_s25, %s1914_s3 }
  0x43   : > { %p1344_p12 = pnand %p1342_p11, %p1616_p8 }
  0x45   : > { %p1345_p13 = pneg %p1344_p12 }
  0x47   : > { %p1350_p2 = pnand %p1348_p0, %p1345_p13 }
  0x49   : > { %1353 = shalt.err (!%p1350_p2)
}
  0x4a   : > { %s1354_s18 = scalar_lea.vmem %s1606_s21, 1024  ;;  %p1362_p4 = scmp.lt.s32.totalorder %s1606_s21, %s1606_s21 }
  0x4b   : > { %p1355_p5 = scmp.ne.s32.totalorder %s1606_s21, %s1354_s18  ;;  %p1363_p10 = scmp.lt.s32.totalorder %s1354_s18, %s1354_s18 }
  0x4d   : > { %p1357_p7 = pnand %p1355_p5, %p1616_p8  ;;  %p1364_p11 = por %p1363_p10, %p1362_p4 }
  0x4f   : > { %p1358_p9 = pneg %p1357_p7 }
  0x51   : > { %p1365_p12 = pnand %p1364_p11, %p1358_p9 }
  0x53   : > { %1368 = shalt.err (!%p1365_p12)
}
  0x54   : > { %1186 = dma.hbm_to_vmem [thread:$0]  (!%p1600_p6), %s1914_s3, 1024, %s1606_s21, [#allocation6], %s1506_s17, %s1506_s17, %s1507_s20  }
  0x55   : > { %s1508_s22 = smov [#allocation10]   ;;  %s1369_s26 = scalar_lea.hbm %s1918_s7, 1024 }
  0x56   : > { %s312_s23 = sshll.u32 %s1508_s22, 4  ;;  %p1370_p13 = scmp.ne.s32.totalorder %s1918_s7, %s1369_s26  ;;  %s313_s23 = int_to_ptr.vmem [resolvable:$true] %s312_s23 }
  0x57   : > { %p1376_p5 = scmp.lt.u32.totalorder %s1369_s26, %s1918_s7 }
  0x58   : > { %p1372_p0 = pnand %p1370_p13, %p1616_p8 }
  0x5a   : > { %p1373_p2 = pneg %p1372_p0 }
  0x5c   : > { %p1378_p7 = pnand %p1376_p5, %p1373_p2 }
  0x5e   : > { %1381 = shalt.err (!%p1378_p7)
}
  0x5f   : > { %s1382_s21 = scalar_lea.vmem %s313_s23, 1024  ;;  %p1390_p11 = scmp.lt.s32.totalorder %s313_s23, %s313_s23 }
  0x60   : > { %p1383_p9 = scmp.ne.s32.totalorder %s313_s23, %s1382_s21  ;;  %p1391_p12 = scmp.lt.s32.totalorder %s1382_s21, %s1382_s21 }
  0x62   : > { %p1385_p4 = pnand %p1383_p9, %p1616_p8  ;;  %p1392_p1 = por %p1391_p12, %p1390_p11 }
  0x64   : > { %p1386_p10 = pneg %p1385_p4 }
  0x66   : > { %p1393_p3 = pnand %p1392_p1, %p1386_p10 }
  0x68   : > { %1396 = shalt.err (!%p1393_p3)
}
  0x69   : > { %1192 = dma.hbm_to_vmem [thread:$0]  (!%p1600_p6), %s1918_s7, 1024, %s313_s23, [#allocation9], %s1506_s17, %s1506_s17, %s1507_s20  }
  0x6a   : > { %s988_s19 = sadd.s32 4294967294, %s1501_s12   ;;  %s1715_s27 = sadd.s32 1, %s1501_s12  }
  0x6b   : > { %s31_s22 = ssub.s32 %s1501_s12, %s1715_s27  ;;  %s34_s24 = sadd.s32 1, %s1497_s11 }
  0x6c   : > { %p32_p1 = scmp.eq.s32.totalorder %s31_s22, 0  ;;  %p41_p3 = scmp.ne.s32.totalorder %s1497_s11, %s1493_s10 }
  0x6d   : > { %p42_p8 = scmp.eq.s32.totalorder %s1501_s12, 0  ;;  %p47_p13 = scmp.ne.s32.totalorder %s1493_s10, %s1489_s30 }
  0x6e   : > { %s1726_s25 = scalar_select %p32_p1, %s1497_s11, %s34_s24  }
  0x6f   : > { %p1728_p0 = por %p42_p8, %p41_p3  ;;  %p1932_p2 = scmp.eq.s32.totalorder %s1584_s15, 0 }
  0x70   : > { %p239_p5 = scmp.eq.s32.totalorder %s1584_s15, 1  ;;  %p245_p7 = scmp.eq.s32.totalorder %s988_s19, 1 }
  0x71   : > { %p1734_p6 = por %p1932_p2, %p47_p13  ;;  %p1205_p9 = scmp.lt.s32.totalorder %s1501_s12, 2 }
  0x72   : > { %s329_s20 = sand.u32 1, %s1497_s11   ;;  %p1741_p4 = por %p239_p5, %p41_p3 }
  0x73   : > { %p1745_p10 = por %p245_p7, %p47_p13  ;;  %s995_s29 = sshll.u32 %s329_s20, 2 }
  0x74   : > { %s1934_s23 = scalar_select %p1741_p4, 1, 0 }
  0x75   : > { %s1935_s28 = scalar_select %p1745_p10, 1, 0 }
  0x76   : > { %s996_s13 = sshll.u32 %s1501_s12, 6  ;;  %s333_s9 = scalar_lea.vmem [#allocation2], %s995_s29 }
  0x77   : > { %s1753_s14 = scalar_lea.hbm %s1911_s0, %s996_s13  ;;  %s340_s19 = sshll.u32 %s333_s9, 4  ;;  %s1755_s19 = int_to_ptr.vmem [resolvable:$true] %s340_s19 }
  0x78   : > { %p1759_p11 = pnand %p1205_p9, %p1728_p0  ;;  %s330_s24 = scalar_lea.sflag [#allocation3], %s329_s20 }
  0x79   : > { %s1397_s1 = scalar_lea.hbm %s1753_s14, 64  ;;  %s1402_s18 = scalar_lea.hbm %s1911_s0, 128 }
  0x7a   : > { %p1398_p12 = scmp.ne.s32.totalorder %s1753_s14, %s1397_s1  ;;  %p1399_p1 = pneg %p1759_p11 }
  0x7b   : > { %p1403_p13 = scmp.lt.u32.totalorder %s1753_s14, %s1911_s0  ;;  %p1404_p0 = scmp.lt.u32.totalorder %s1402_s18, %s1397_s1 }
  0x7c   : > { %p1400_p3 = pnand %p1399_p1, %p1398_p12  ;;  %p1406_p5 = scmp.lt.u32.totalorder %s1397_s1, %s1753_s14 }
  0x7d   : > { %p1405_p2 = por %p1404_p0, %p1403_p13 }
  0x7e   : > { %p1401_p8 = pneg %p1400_p3 }
  0x7f   : > { %p1407_p7 = por %p1406_p5, %p1405_p2 }
  0x81   : > { %p1408_p9 = pnand %p1407_p7, %p1401_p8 }
  0x83   : > { %1411 = shalt.err (!%p1408_p9)
}
  0x84   : > { %s1412_s20 = scalar_lea.vmem %s1755_s19, 64  ;;  %s1509_s9 = smov [#allocation2]  }
  0x85   : > { %p1413_p12 = scmp.ne.s32.totalorder %s1755_s19, %s1412_s20  ;;  %s1417_s29 = sshll.u32 %s1509_s9, 4  ;;  %s1418_s29 = int_to_ptr.vmem [resolvable:$false] %s1417_s29 }
  0x86   : > { %s1419_s13 = scalar_lea.vmem %s1418_s29, 128  ;;  %p1420_p4 = scmp.lt.s32.totalorder %s1755_s19, %s1418_s29 }
  0x87   : > { %p1415_p3 = pnand %p1413_p12, %p1399_p1  ;;  %p1421_p13 = scmp.lt.s32.totalorder %s1419_s13, %s1412_s20 }
  0x89   : > { %p1416_p10 = pneg %p1415_p3  ;;  %p1422_p0 = por %p1421_p13, %p1420_p4 }
  0x8b   : > { %p1423_p2 = pnand %p1422_p0, %p1416_p10 }
  0x8d   : > { %1426 = shalt.err (!%p1423_p2)
}
  0x8e   : > { %1196 = dma.hbm_to_vmem [thread:$0]  (!%p1759_p11), %s1753_s14, 64, %s1755_s19, %s330_s24  }
  0x8f   : > { %p1937_p8 = scmp.ne.s32.totalorder %s1927_s16, 0 }
  0x90   : > { %s1791_s1 = sand.u32 (!%p1937_p8), 1, %s1493_s10  }
  0x91   : > { %349 = sbr.rel (%p1937_p8) target bundleno = 1089 (0x441), region = 56  ;;  %s998_s18 = sshll.u32 (!%p1937_p8), %s1791_s1, 2 }
  0x92   : > { %s352_s26 = scalar_lea.sflag (!%p1937_p8), [#allocation3], %s1791_s1  ;;  %s1795_s21 = scalar_lea.vmem (!%p1937_p8), [#allocation2], %s998_s18 }
  0x98   : > { %1472 = dma.done.wait (%p1734_p6), %s352_s26, 64  }
  0x99   : > { %1474 = vsyncadd (%p1734_p6), %s352_s26, 4294967232  ;;  %p1938_p4 = scmp.eq.s32.totalorder %s1584_s15, 0 }
  0x9b   : > { %1476 = dma.done.wait (%p1938_p4), [#allocation6], 2048   ;;  %p1939_p10 = pmov %p1938_p4 }
  0x9c   : > { %p1940_p11 = pmov %p1938_p4 }
  0x9d   : > { %1478 = vsyncadd (%p1939_p10), [#allocation6], 4294965248 }
  0x9e   : > { %1480 = dma.done.wait (%p1940_p11), [#allocation9], 2048   ;;  %p1941_p1 = pmov %p1938_p4 }
  0x9f   : > { %v1510_v0 = vmov 0.0   ;;  %vm1511_vm0 = vmmov 0   ;;  %v1251_v1 = vld [vmem:[#allocation5] sm:$0xff]   ;;  %v1252_v2 = vld [vmem:[#allocation5 + $0x8] sm:$0xff]   ;;  %v1253_v3 = vld [vmem:[#allocation5 + $0x10] sm:$0xff]   ;;  %s1003_s29 = sshll.u32 %s1791_s1, 3 }
  0xa0   : > { %1482 = vsyncadd (%p1941_p1), [#allocation9], 4294965248  ;;  %1080 = vmatprep.subr.bf16.mxu0 %v1510_v0  ;;  %1096 = vmatprep.mubr.msk.bf16.mxu0 %vm1511_vm0, %v1510_v0  ;;  %v1259_v4 = vld [vmem:[#allocation7] sm:$0xff]   ;;  %v1254_v5 = vld [vmem:[#allocation5 + $0x18] sm:$0xff]   ;;  %s1041_s13 = sshll.u32 %s1584_s15, 7  ;;  %s405_s18 = scalar_lea.vmem [#allocation11], %s1003_s29 }
  0xa1   : > { %1100 = vmatprep.subr.bf16.mxu1 %v1510_v0  ;;  %1116 = vmatprep.mubr.msk.bf16.mxu1 %vm1511_vm0, %v1510_v0  ;;  %v1260_v6 = vld [vmem:[#allocation7 + $0x8] sm:$0xff]   ;;  %v1255_v7 = vld [vmem:[#allocation5 + $0x20] sm:$0xff]   ;;  %v1261_v8 = vld [vmem:[#allocation7 + $0x10] sm:$0xff]   ;;  %s880_s26 = sshll.u32 %s405_s18, 4  ;;  %s1942_s17 = sld [smem:[#allocation17_spill]]  ;;  %s1869_s26 = int_to_ptr.vmem [resolvable:$true] %s880_s26 }
  0xa2   : > { %1081 = vmatpush3.bf16.msra.mxu0 %v1251_v1  ;;  %1101 = vmatpush3.bf16.msra.mxu1 %v1259_v4  ;;  %v1256_v9 = vld [vmem:[#allocation5 + $0x28] sm:$0xff]   ;;  %v1262_v10 = vld [vmem:[#allocation7 + $0x18] sm:$0xff]   ;;  %v1257_v11 = vld [vmem:[#allocation5 + $0x30] sm:$0xff]   ;;  %s867_s19 = scalar_lea.sflag [#allocation4], %s1791_s1  ;;  %s1427_s22 = scalar_lea.vmem %s1869_s26, 128 }
  0xa3   : > { %1082 = vmatprep.subr.bf16.mxu0 %v1510_v0  ;;  %1102 = vmatprep.subr.bf16.mxu1 %v1510_v0  ;;  %v1263_v12 = vld [vmem:[#allocation7 + $0x20] sm:$0xff]   ;;  %v1258_v13 = vld [vmem:[#allocation5 + $0x38] sm:$0xff]   ;;  %v1264_v14 = vld [vmem:[#allocation7 + $0x28] sm:$0xff]   ;;  %p1428_p6 = scmp.ne.s32.totalorder %s1869_s26, %s1427_s22  ;;  %p1943_p5 = scmp.ne.s32.totalorder %s1934_s23, 0 }
  0xa4   : > { %v407_v15 = vld [vmem:[%s1795_s21] sm:$0xf]  ;;  %v1265_v16 = vld [vmem:[#allocation7 + $0x30] sm:$0xff]   ;;  %v1267_v18 = vld [vmem:[#allocation8] sm:$0xff]   ;;  %s1512_s15 = smov [#allocation11]  }
  0xa5   : > { %v1266_v17 = vld [vmem:[#allocation7 + $0x38] sm:$0xff]   ;;  %v1268_v19 = vld [vmem:[#allocation8 + $0x8] sm:$0xff]   ;;  %v1269_v20 = vld [vmem:[#allocation8 + $0x10] sm:$0xff]   ;;  %p1429_p7 = pnand %p1428_p6, %p1943_p5  ;;  %s1431_s24 = sshll.u32 %s1512_s15, 4  ;;  %s1432_s24 = int_to_ptr.vmem [resolvable:$false] %s1431_s24 }
  0xa6   : > { %1083 = vmatpush3.bf16.msra.mxu0 %v1252_v2  ;;  %1103 = vmatpush3.bf16.msra.mxu1 %v1260_v6  ;;  %v1270_v21 = vld [vmem:[#allocation8 + $0x18] sm:$0xff]   ;;  %v1271_v22 = vld [vmem:[#allocation8 + $0x20] sm:$0xff]   ;;  %v1272_v23 = vld [vmem:[#allocation8 + $0x28] sm:$0xff]   ;;  %s1433_s20 = scalar_lea.vmem %s1432_s24, 256  ;;  %p1434_p12 = scmp.lt.s32.totalorder %s1869_s26, %s1432_s24 }
  0xa7   : > { %1084 = vmatprep.subr.bf16.mxu0 %v1510_v0  ;;  %1104 = vmatprep.subr.bf16.mxu1 %v1510_v0  ;;  %v1004_v24 = vld [vmem:[%s1913_s2] ss:$0 sm:$0xff]  ;;  %v1273_v33 = vld [vmem:[#allocation8 + $0x30] sm:$0xff]   ;;  %v1275_v35 = vld [vmem:[#allocation10] sm:$0xff]   ;;  %s1867_s14 = scalar_lea.hbm %s1942_s17, %s1041_s13  ;;  %p1430_p9 = pneg %p1429_p7 }
  0xa8   : > { %v1274_v34 = vld [vmem:[#allocation8 + $0x38] sm:$0xff]   ;;  %v1276_v36 = vld [vmem:[#allocation10 + $0x8] sm:$0xff]   ;;  %v1277_v37 = vld [vmem:[#allocation10 + $0x10] sm:$0xff]   ;;  %p1435_p3 = scmp.lt.s32.totalorder %s1433_s20, %s1427_s22 }
  0xa9   : > { %v1278_v38 = vld [vmem:[#allocation10 + $0x18] sm:$0xff]   ;;  %v1279_v39 = vld [vmem:[#allocation10 + $0x20] sm:$0xff]   ;;  %v1280_v40 = vld [vmem:[#allocation10 + $0x28] sm:$0xff]  }
  0xaa   : > { %1085 = vmatpush3.bf16.msra.mxu0 %v1253_v3  ;;  %1105 = vmatpush3.bf16.msra.mxu1 %v1261_v8  ;;  %v1013_v41 = vld [vmem:[%s1915_s4] ss:$0 sm:$0xff]  ;;  %v1281_v50 = vld [vmem:[#allocation10 + $0x30] sm:$0xff]   ;;  %p1436_p13 = por %p1435_p3, %p1434_p12 }
  0xab   : > { %1086 = vmatprep.subr.bf16.mxu0 %v1510_v0  ;;  %1106 = vmatprep.subr.bf16.mxu1 %v1510_v0  ;;  %v1282_v51 = vld [vmem:[#allocation10 + $0x38] sm:$0xff]  }
  0xac   : > { %v1022_v52 = vld [vmem:[%s1917_s6] ss:$0 sm:$0xff]  ;;  %p1437_p0 = pnand %p1436_p13, %p1430_p9 }
  0xad   : > { %v1031_v61 = vld [vmem:[%s1919_s8] ss:$0 sm:$0xff] }
  0xae   : > { %1087 = vmatpush3.bf16.msra.mxu0 %v1254_v5  ;;  %1107 = vmatpush3.bf16.msra.mxu1 %v1262_v10 }
  0xaf   : > { %1088 = vmatprep.subr.bf16.mxu0 %v1510_v0  ;;  %1108 = vmatprep.subr.bf16.mxu1 %v1510_v0 }
  0xb2   : > { %1089 = vmatpush3.bf16.msra.mxu0 %v1255_v7  ;;  %1109 = vmatpush3.bf16.msra.mxu1 %v1263_v12 }
  0xb3   : > { %1090 = vmatprep.subr.bf16.mxu0 %v1510_v0  ;;  %1110 = vmatprep.subr.bf16.mxu1 %v1510_v0 }
  0xb6   : > { %1091 = vmatpush3.bf16.msra.mxu0 %v1256_v9  ;;  %1111 = vmatpush3.bf16.msra.mxu1 %v1264_v14 }
  0xb7   : > { %1092 = vmatprep.subr.bf16.mxu0 %v1510_v0  ;;  %1112 = vmatprep.subr.bf16.mxu1 %v1510_v0 }
  0xba   : > { %1093 = vmatpush3.bf16.msra.mxu0 %v1257_v11  ;;  %1113 = vmatpush3.bf16.msra.mxu1 %v1265_v16 }
  0xbb   : > { %1094 = vmatprep.subr.bf16.mxu0 %v1510_v0  ;;  %1114 = vmatprep.subr.bf16.mxu1 %v1510_v0 }
  0xbe   : > { %1095 = vmatpush3.bf16.msra.mxu0 %v1258_v13  ;;  %1115 = vmatpush3.bf16.msra.mxu1 %v1266_v17 }
  0xbf   : > { %1120 = vmatprep.subr.bf16.mxu0 %v1510_v0  ;;  %1140 = vmatprep.subr.bf16.mxu1 %v1510_v0 }
  0xc1   : > { %1097 = vmatmul.mubr.bf16.vlgmr.msra.gmra.mrb[0].mxu0 %v407_v15 }
  0xc2   : > { %1136 = vmatprep.mubr.msk.bf16.mxu0 %vm1511_vm0, %v1510_v0  ;;  %1121 = vmatpush3.bf16.msra.mxu0 %v1267_v18 }
  0xc3   : > { %1122 = vmatprep.subr.bf16.mxu0 %v1510_v0 }
  0xc6   : > { %1123 = vmatpush3.bf16.msra.mxu0 %v1268_v19 }
  0xc7   : > { %1124 = vmatprep.subr.bf16.mxu0 %v1510_v0 }
  0xca   : > { %1125 = vmatpush3.bf16.msra.mxu0 %v1269_v20 }
  0xcb   : > { %1126 = vmatprep.subr.bf16.mxu0 %v1510_v0 }
  0xce   : > { %1127 = vmatpush3.bf16.msra.mxu0 %v1270_v21 }
  0xcf   : > { %1128 = vmatprep.subr.bf16.mxu0 %v1510_v0 }
  0xd2   : > { %1129 = vmatpush3.bf16.msra.mxu0 %v1271_v22 }
  0xd3   : > { %1130 = vmatprep.subr.bf16.mxu0 %v1510_v0 }
  0xd6   : > { %1131 = vmatpush3.bf16.msra.mxu0 %v1272_v23 }
  0xd7   : > { %1132 = vmatprep.subr.bf16.mxu0 %v1510_v0 }
  0xda   : > { %1133 = vmatpush3.bf16.msra.mxu0 %v1273_v33 }
  0xdb   : > { %1134 = vmatprep.subr.bf16.mxu0 %v1510_v0 }
  0xde   : > { %1135 = vmatpush3.bf16.msra.mxu0 %v1274_v34 }
 0x194   : > { %v513_v25 = vpop.f32.mrb[0].mxu0 }
 0x195   : > { %v514_v26 = vadd.f32 %v1004_v24, %v513_v25  ;;  %v1098_v27 = vpop.f32.mrb[1].mxu0 }
 0x196   : > { %v516_v28 = vpop.f32.mrb[2].mxu0 }
 0x197   : > { %vm519_vm1 = vcmp.gt.f32.partialorder %v514_v26, 0.0  ;;  %v520_v29 = vmul.f32 0.2, %v514_v26  ;;  %v1099_v30 = vpop.f32.mrb[3].mxu0 }
 0x199   : > { %v521_v31 = vsel %vm519_vm1, %v514_v26, %v520_v29 }
 0x19a   : > { %v522_v32 = vpack.c.bf16 %v521_v31, %v521_v31 }
 0x19c   : > { %1117 = vmatmul.mubr.bf16.vlgmr.msra.gmra.mrb[0].mxu1 %v522_v32 }
 0x19d   : > { %1156 = vmatprep.mubr.msk.bf16.mxu1 %vm1511_vm0, %v1510_v0  ;;  %1141 = vmatpush3.bf16.msra.mxu1 %v1275_v35 }
 0x19e   : > { %1142 = vmatprep.subr.bf16.mxu1 %v1510_v0 }
 0x1a1   : > { %1143 = vmatpush3.bf16.msra.mxu1 %v1276_v36 }
 0x1a2   : > { %1144 = vmatprep.subr.bf16.mxu1 %v1510_v0 }
 0x1a5   : > { %1145 = vmatpush3.bf16.msra.mxu1 %v1277_v37 }
 0x1a6   : > { %1146 = vmatprep.subr.bf16.mxu1 %v1510_v0 }
 0x1a9   : > { %1147 = vmatpush3.bf16.msra.mxu1 %v1278_v38 }
 0x1aa   : > { %1148 = vmatprep.subr.bf16.mxu1 %v1510_v0 }
 0x1ad   : > { %1149 = vmatpush3.bf16.msra.mxu1 %v1279_v39 }
 0x1ae   : > { %1150 = vmatprep.subr.bf16.mxu1 %v1510_v0 }
 0x1b1   : > { %1151 = vmatpush3.bf16.msra.mxu1 %v1280_v40 }
 0x1b2   : > { %1152 = vmatprep.subr.bf16.mxu1 %v1510_v0 }
 0x1b5   : > { %1153 = vmatpush3.bf16.msra.mxu1 %v1281_v50 }
 0x1b6   : > { %1154 = vmatprep.subr.bf16.mxu1 %v1510_v0 }
 0x1b9   : > { %1155 = vmatpush3.bf16.msra.mxu1 %v1282_v51 }
 0x26f   : > { %v628_v42 = vpop.f32.mrb[0].mxu1 }
 0x270   : > { %v629_v43 = vadd.f32 %v1013_v41, %v628_v42  ;;  %v1118_v44 = vpop.f32.mrb[1].mxu1 }
 0x271   : > { %v631_v45 = vpop.f32.mrb[2].mxu1 }
 0x272   : > { %vm634_vm2 = vcmp.gt.f32.partialorder %v629_v43, 0.0  ;;  %v635_v46 = vmul.f32 0.2, %v629_v43  ;;  %v1119_v47 = vpop.f32.mrb[3].mxu1 }
 0x274   : > { %v636_v48 = vsel %vm634_vm2, %v629_v43, %v635_v46 }
 0x275   : > { %v637_v49 = vpack.c.bf16 %v636_v48, %v636_v48 }
 0x277   : > { %1137 = vmatmul.mubr.bf16.vlgmr.msra.gmra.mrb[4].mxu0 %v637_v49 }
 0x34a   : > { %v743_v53 = vpop.f32.mrb[4].mxu0 }
 0x34b   : > { %v744_v54 = vadd.f32 %v1022_v52, %v743_v53  ;;  %v1138_v55 = vpop.f32.mrb[5].mxu0 }
 0x34c   : > { %v746_v56 = vpop.f32.mrb[6].mxu0 }
 0x34d   : > { %vm749_vm3 = vcmp.gt.f32.partialorder %v744_v54, 0.0  ;;  %v750_v57 = vmul.f32 0.2, %v744_v54  ;;  %v1139_v58 = vpop.f32.mrb[7].mxu0 }
 0x34f   : > { %v751_v59 = vsel %vm749_vm3, %v744_v54, %v750_v57 }
 0x350   : > { %v752_v60 = vpack.c.bf16 %v751_v59, %v751_v59 }
 0x352   : > { %1157 = vmatmul.mubr.bf16.vlgmr.msra.gmra.mrb[4].mxu1 %v752_v60 }
 0x425   : > { %v858_v62 = vpop.f32.mrb[4].mxu1 }
 0x426   : > { %v859_v63 = vadd.f32 %v1031_v61, %v858_v62  ;;  %v1158_v0 = vpop.f32.mrb[5].mxu1 }
 0x427   : > { %v861_v1 = vpop.f32.mrb[6].mxu1 }
 0x428   : > { %1283 = vtanh.f32 %v859_v63  ;;  %v1159_v2 = vpop.f32.mrb[7].mxu1 }
 0x432   : > { %v1284_v3 = vpop.eup %1283 }
 0x433   : > { %865 = vst [vmem:[%s405_s18] sm:$0xff] %v1284_v3 }
 0x434   : > { %1440 = shalt.err (!%p1437_p0)
}
 0x435   : > { %s1441_s1 = scalar_lea.hbm %s1867_s14, 128  ;;  %s1445_s13 = scalar_lea.hbm %s1942_s17, 256 }
 0x436   : > { %p1442_p2 = scmp.ne.s32.totalorder %s1867_s14, %s1441_s1  ;;  %p1446_p10 = scmp.lt.u32.totalorder %s1867_s14, %s1942_s17 }
 0x437   : > { %p1447_p11 = scmp.lt.u32.totalorder %s1445_s13, %s1441_s1  ;;  %p1449_p6 = scmp.lt.u32.totalorder %s1441_s1, %s1867_s14 }
 0x438   : > { %p1443_p8 = pnand %p1442_p2, %p1943_p5 }
 0x439   : > { %p1448_p1 = por %p1447_p11, %p1446_p10 }
 0x43a   : > { %p1444_p4 = pneg %p1443_p8 }
 0x43b   : > { %p1450_p7 = por %p1449_p6, %p1448_p1 }
 0x43d   : > { %p1451_p9 = pnand %p1450_p7, %p1444_p4 }
 0x43f   : > { %1454 = shalt.err (!%p1451_p9)
}
 0x440   : > { %1178 = dma.vmem_to_hbm [thread:$0]  (%p1943_p5), %s1869_s26, 128, %s1867_s14, %s867_s19  }
 0x441 PF: > { %s892_s16 = sand.u32 1, %s1489_s30   ;;  %p1944_p12 = scmp.ne.s32.totalorder %s1935_s28, 0 }
 0x442   : > { %p1945_p3 = scmp.ge.s32.totalorder %s1501_s12, 2  ;;  %s893_s22 = scalar_lea.sflag [#allocation4], %s892_s16 }
 0x444   : > { %p1198_p13 = pnand %p1945_p3, %p1944_p12 }
 0x446   : > { %1484 = dma.done.wait (!%p1198_p13), %s893_s22, 128  }
 0x447   : > { %1486 = vsyncadd (!%p1198_p13), %s893_s22, 4294967168  ;;  %p24_p0 = scmp.ge.s32.totalorder %s1715_s27, 4   ;;  %s1946_s30 = smov %s1493_s10 }
 0x448   : > { %s1947_s10 = smov %s1497_s11  ;;  %s1948_s11 = smov %s1726_s25 }
 0x449   : > { %s1949_s12 = smov %s1715_s27  ;;  %26 = sbr.rel (!%p24_p0) target bundleno = 10 (0xa), region = 117 }
 0x450   :  { %898 = vsyncpa [#allocation3], 1 }
 0x451   :  { %900 = vsyncpa [#allocation3 + $0x1], 1 }
 0x452   :  { %901 = vsyncpa [#allocation6], 1 }
 0x453   :  { %902 = vsyncpa [#allocation9], 1 }
 0x454   :  { %903 = vsyncpa [#allocation4], 1 }
 0x455   :  { %905 = vsyncpa [#allocation4 + $0x1], 1 }

</bundles_post_ra>
